<compile_context>
chip_gen: v5e
topology: v5e:2x2
jax: 0.10.0
libtpu: 0.0.40
codegen_flags: <defaults>
</compile_context>

<pallas_src>
import numpy as np
import jax
import jax.numpy as jnp
from jax.experimental import pallas as pl
from jax.experimental.pallas import tpu as pltpu

# ----- model hyper-parameters (small, consistent with the module) -----------
D_MODEL    = 32
NUM_HEADS  = 4
NUM_LAYERS = 2
VOCAB      = 16
SEQ        = 8
BATCH      = 2
DIM_FF     = 2048                      # nn.TransformerEncoderLayer default
HEAD_DIM   = D_MODEL // NUM_HEADS
LN_EPS     = 1e-5

ROWS     = BATCH * SEQ                 # 16 flattened (b, s) token rows
A_ROWS   = ROWS * NUM_HEADS            # 64 head-stacked rows: r = h*ROWS + b*SEQ + s
NEG_BIG  = -1e30
FF_CHUNK = 512
N_FF_CHUNKS = DIM_FF // FF_CHUNK

# ----- global f32 slab layout (mask + embedding + output Linear) ------------
R_MASK = 0                             # rows [0, 64)   : additive attention mask
R_EMB  = R_MASK + A_ROWS               # rows [64, 80)  : embedding table (16, 32)
R_LW   = R_EMB + VOCAB                 # rows [80, 112) : lin_w^T (32, 16)
R_LB   = R_LW + D_MODEL                # row  112       : lin_b   (1, 16)
GLOB_ROWS = 120                        # padded to a sublane multiple
GLOB_COLS = 64

# ----- per-layer vector slab rows (width DIM_FF, small vectors use lanes 0:32)
V_C1, V_BQ, V_BK, V_BV, V_BO, V_G1, V_BE1, V_C2, V_G2, V_BE2 = range(10)
NVEC = 10


# ----------------------------- kernel ---------------------------------------
def _layer_norm(x, gamma, beta):
    mu = jnp.mean(x, axis=-1, keepdims=True)
    xc = x - mu
    var = jnp.mean(xc * xc, axis=-1, keepdims=True)
    return xc * jax.lax.rsqrt(var + LN_EPS) * gamma + beta


def transformer_kernel(tok_ref, glob_ref, wat_ref, vs_ref, w1_ref, w2_ref,
                       o_ref, x_scr):
    """One grid step = one encoder layer; activation carried in VMEM scratch."""
    l = pl.program_id(0)

    # ---- layer 0 only: fused embedding lookup (one-hot MXU matmul) ----------
    @pl.when(l == 0)
    def _embed():
        tok = tok_ref[...]                                            # (16, 1) i32
        vid = jax.lax.broadcasted_iota(jnp.int32, (ROWS, VOCAB), 1)
        onehot = (tok == vid).astype(jnp.float32)                     # (16, 16)
        emb = glob_ref[R_EMB:R_EMB + VOCAB, 0:D_MODEL]                # (16, 32)
        x_scr[...] = jnp.dot(onehot, emb, preferred_element_type=jnp.float32)

    xf = x_scr[...]                                                   # (16, 32) f32

    # ---- self-attention ------------------------------------------------------
    wq = wat_ref[0]; wk = wat_ref[1]; wv = wat_ref[2]; wo = wat_ref[3]   # (32,32) each
    bq = vs_ref[V_BQ:V_BQ + 1, 0:D_MODEL]
    bk = vs_ref[V_BK:V_BK + 1, 0:D_MODEL]
    bv = vs_ref[V_BV:V_BV + 1, 0:D_MODEL]
    bo = vs_ref[V_BO:V_BO + 1, 0:D_MODEL]

    scale = 1.0 / (HEAD_DIM ** 0.5)
    q = (jnp.dot(xf, wq, preferred_element_type=jnp.float32) + bq) * scale
    k = jnp.dot(xf, wk, preferred_element_type=jnp.float32) + bk
    v = jnp.dot(xf, wv, preferred_element_type=jnp.float32) + bv

    # Stack heads on rows (head-major row order) via aligned sublane concat;
    # bf16 operands, f32 accumulation on the MXU.
    qb = jnp.concatenate(
        [q[:, h * HEAD_DIM:(h + 1) * HEAD_DIM] for h in range(NUM_HEADS)],
        axis=0).astype(jnp.bfloat16)                                  # (64, 8)
    kb = jnp.concatenate(
        [k[:, h * HEAD_DIM:(h + 1) * HEAD_DIM] for h in range(NUM_HEADS)],
        axis=0).astype(jnp.bfloat16)
    vb = jnp.concatenate(
        [v[:, h * HEAD_DIM:(h + 1) * HEAD_DIM] for h in range(NUM_HEADS)],
        axis=0).astype(jnp.bfloat16)

    s = jax.lax.dot_general(qb, kb, (((1,), (1,)), ((), ())),
                            preferred_element_type=jnp.float32)       # (64, 64)
    s = s + glob_ref[R_MASK:R_MASK + A_ROWS, 0:A_ROWS]                # additive const mask
    m = jnp.max(s, axis=-1, keepdims=True)
    e = jnp.exp(s - m)
    denom = jnp.sum(e, axis=-1, keepdims=True)
    p = (e * pl.reciprocal(denom, approx=True)).astype(jnp.bfloat16)
    ab = jnp.dot(p, vb, preferred_element_type=jnp.float32)           # (64, 8)

    # Output projection folded per head: sum_h  ab_h @ Wo^T[h*8:(h+1)*8, :]
    attn = jnp.zeros((ROWS, D_MODEL), jnp.float32)
    for h in range(NUM_HEADS):
        attn = attn + jnp.dot(ab[h * ROWS:(h + 1) * ROWS, :],
                              wo[h * HEAD_DIM:(h + 1) * HEAD_DIM, :],
                              preferred_element_type=jnp.float32)
    attn = attn + bo

    # ---- residual + LayerNorm 1 ----------------------------------------------
    h1n = _layer_norm(xf + attn,
                      vs_ref[V_G1:V_G1 + 1, 0:D_MODEL],
                      vs_ref[V_BE1:V_BE1 + 1, 0:D_MODEL])

    # ---- feed-forward, chunked over DIM_FF (bf16 weights, f32 accumulation) --
    h1b = h1n.astype(jnp.bfloat16)
    acc = jnp.zeros((ROWS, D_MODEL), jnp.float32)
    for c in range(N_FF_CHUNKS):
        lo = c * FF_CHUNK
        hc = jnp.dot(h1b, w1_ref[:, lo:lo + FF_CHUNK],
                     preferred_element_type=jnp.float32)               # (16, 512)
        hc = jnp.maximum(hc + vs_ref[V_C1:V_C1 + 1, lo:lo + FF_CHUNK],
                         0.0).astype(jnp.bfloat16)                     # fused bias+ReLU+cast
        acc = acc + jnp.dot(hc, w2_ref[lo:lo + FF_CHUNK, :],
                            preferred_element_type=jnp.float32)        # (16, 32)
    ff = acc + vs_ref[V_C2:V_C2 + 1, 0:D_MODEL]

    # ---- residual + LayerNorm 2 ----------------------------------------------
    xout = _layer_norm(h1n + ff,
                       vs_ref[V_G2:V_G2 + 1, 0:D_MODEL],
                       vs_ref[V_BE2:V_BE2 + 1, 0:D_MODEL])
    x_scr[...] = xout

    # ---- last layer only: output Linear(d_model -> vocab) --------------------
    @pl.when(l == pl.num_programs(0) - 1)
    def _final():
        lw = glob_ref[R_LW:R_LW + D_MODEL, 0:VOCAB]                    # (32, 16)
        lb = glob_ref[R_LB:R_LB + 1, 0:VOCAB]                          # (1, 16)
        o_ref[...] = jnp.dot(xout, lw, preferred_element_type=jnp.float32) + lb


# ----------------------------- pallas_call wrapper ---------------------------
_grid_spec = pltpu.PrefetchScalarGridSpec(
    num_scalar_prefetch=0,
    grid=(NUM_LAYERS,),
    in_specs=[
        pl.BlockSpec((ROWS, 1), lambda l: (0, 0)),                        # tokens (resident)
        pl.BlockSpec((GLOB_ROWS, GLOB_COLS), lambda l: (0, 0)),           # mask/emb/linear (resident)
        pl.BlockSpec((None, 4, D_MODEL, D_MODEL), lambda l: (l, 0, 0, 0)),  # Wq/Wk/Wv/Wo
        pl.BlockSpec((None, NVEC, DIM_FF), lambda l: (l, 0, 0)),          # bias / LN vector slab
        pl.BlockSpec((None, D_MODEL, DIM_FF), lambda l: (l, 0, 0)),       # w1 (D, FF) bf16
        pl.BlockSpec((None, DIM_FF, D_MODEL), lambda l: (l, 0, 0)),       # w2 (FF, D) bf16
    ],
    out_specs=pl.BlockSpec((ROWS, VOCAB), lambda l: (0, 0)),
    scratch_shapes=[pltpu.VMEM((ROWS, D_MODEL), jnp.float32)],            # carried activation
)

_forward_call = pl.pallas_call(
    transformer_kernel,
    out_shape=jax.ShapeDtypeStruct((ROWS, VOCAB), jnp.float32),
    grid_spec=_grid_spec,
    compiler_params=pltpu.CompilerParams(dimension_semantics=("arbitrary",)),
)


@jax.jit
def transformer_forward(tokens, params):
    tok = tokens.reshape(ROWS, 1).astype(jnp.int32)
    logits = _forward_call(tok, params["glob"], params["w_attn"],
                           params["vslab"], params["w1"], params["w2"])
    return logits.reshape(BATCH, SEQ, VOCAB)


# ----------------------------- parameter init & packing ----------------------
def _attention_mask_add():
    """Additive mask in head-stacked row order r = h*ROWS + b*SEQ + s."""
    r = np.arange(A_ROWS)
    head = r // ROWS
    batch = (r % ROWS) // SEQ
    valid = (head[:, None] == head[None, :]) & (batch[:, None] == batch[None, :])
    return np.where(valid, 0.0, NEG_BIG).astype(np.float32)


def _bf16_round(a):
    return np.asarray(jnp.asarray(a, dtype=jnp.bfloat16).astype(jnp.float32))


def init_params(key):
    keys = jax.random.split(key, 3 + NUM_LAYERS)

    def nrm(k, shape, scale=0.02):
        return np.asarray(scale * jax.random.normal(k, shape), dtype=np.float32)

    raw = {
        "emb": nrm(keys[0], (VOCAB, D_MODEL), scale=1.0),
        "lin_w": nrm(keys[1], (VOCAB, D_MODEL)),        # PyTorch (V, D)
        "lin_b": nrm(keys[2], (VOCAB,)),
        "layers": [],
    }
    for l in range(NUM_LAYERS):
        lk = jax.random.split(keys[3 + l], 8)
        raw["layers"].append({
            "in_w": nrm(lk[0], (3 * D_MODEL, D_MODEL)),   # PyTorch in_proj_weight
            "in_b": nrm(lk[1], (3 * D_MODEL,)),
            "out_w": nrm(lk[2], (D_MODEL, D_MODEL)),
            "out_b": nrm(lk[3], (D_MODEL,)),
            "l1_w": nrm(lk[4], (DIM_FF, D_MODEL)),
            "l1_b": nrm(lk[5], (DIM_FF,)),
            "l2_w": nrm(lk[6], (D_MODEL, DIM_FF)),
            "l2_b": nrm(lk[7], (D_MODEL,)),
            "g1": np.ones((D_MODEL,), np.float32),
            "be1": np.zeros((D_MODEL,), np.float32),
            "g2": np.ones((D_MODEL,), np.float32),
            "be2": np.zeros((D_MODEL,), np.float32),
        })

    # ---- pack into the kernel's slabs ----------------------------------------
    glob = np.zeros((GLOB_ROWS, GLOB_COLS), np.float32)
    glob[R_MASK:R_MASK + A_ROWS, 0:A_ROWS] = _attention_mask_add()
    glob[R_EMB:R_EMB + VOCAB, 0:D_MODEL] = raw["emb"]
    glob[R_LW:R_LW + D_MODEL, 0:VOCAB] = raw["lin_w"].T
    glob[R_LB, 0:VOCAB] = raw["lin_b"]

    w_attn = np.zeros((NUM_LAYERS, 4, D_MODEL, D_MODEL), np.float32)
    vslab = np.zeros((NUM_LAYERS, NVEC, DIM_FF), np.float32)
    w1 = np.zeros((NUM_LAYERS, D_MODEL, DIM_FF), np.float32)
    w2 = np.zeros((NUM_LAYERS, DIM_FF, D_MODEL), np.float32)
    for l, lay in enumerate(raw["layers"]):
        w_attn[l, 0] = lay["in_w"][0:D_MODEL].T
        w_attn[l, 1] = lay["in_w"][D_MODEL:2 * D_MODEL].T
        w_attn[l, 2] = lay["in_w"][2 * D_MODEL:].T
        w_attn[l, 3] = lay["out_w"].T
        vslab[l, V_C1, :] = lay["l1_b"]
        vslab[l, V_BQ, 0:D_MODEL] = lay["in_b"][0:D_MODEL]
        vslab[l, V_BK, 0:D_MODEL] = lay["in_b"][D_MODEL:2 * D_MODEL]
        vslab[l, V_BV, 0:D_MODEL] = lay["in_b"][2 * D_MODEL:]
        vslab[l, V_BO, 0:D_MODEL] = lay["out_b"]
        vslab[l, V_G1, 0:D_MODEL] = lay["g1"]
        vslab[l, V_BE1, 0:D_MODEL] = lay["be1"]
        vslab[l, V_C2, 0:D_MODEL] = lay["l2_b"]
        vslab[l, V_G2, 0:D_MODEL] = lay["g2"]
        vslab[l, V_BE2, 0:D_MODEL] = lay["be2"]
        w1[l] = lay["l1_w"].T                           # (D, FF) for plain dot
        w2[l] = lay["l2_w"].T                           # (FF, D) for plain dot

    params = {
        "glob": jnp.asarray(glob),
        "w_attn": jnp.asarray(w_attn),
        "vslab": jnp.asarray(vslab),
        "w1": jnp.asarray(w1).astype(jnp.bfloat16),
        "w2": jnp.asarray(w2).astype(jnp.bfloat16),
    }
    return params, raw


# ----------------------------- pure-numpy reference --------------------------
def _ln_ref(x, g, b):
    mu = x.mean(-1, keepdims=True)
    var = ((x - mu) ** 2).mean(-1, keepdims=True)
    return (x - mu) / np.sqrt(var + LN_EPS) * g + b


def reference_forward(tokens, raw):
    x = raw["emb"][np.asarray(tokens).reshape(-1)]                    # (16, 32)
    for lay in raw["layers"]:
        wq = lay["in_w"][0:D_MODEL].T
        wk = lay["in_w"][D_MODEL:2 * D_MODEL].T
        wv = lay["in_w"][2 * D_MODEL:].T
        bq = lay["in_b"][0:D_MODEL]
        bk = lay["in_b"][D_MODEL:2 * D_MODEL]
        bv = lay["in_b"][2 * D_MODEL:]
        q = (x @ wq + bq) / np.sqrt(HEAD_DIM)
        k = x @ wk + bk
        v = x @ wv + bv
        attn = np.zeros_like(x)
        for b in range(BATCH):
            sl = slice(b * SEQ, (b + 1) * SEQ)
            for h in range(NUM_HEADS):
                hd = slice(h * HEAD_DIM, (h + 1) * HEAD_DIM)
                s = q[sl, hd] @ k[sl, hd].T
                s = s - s.max(-1, keepdims=True)
                p = np.exp(s)
                p = p / p.sum(-1, keepdims=True)
                attn[sl, hd] = p @ v[sl, hd]
        attn = attn @ lay["out_w"].T + lay["out_b"]
        h1 = _ln_ref(x + attn, lay["g1"], lay["be1"])
        w1f = _bf16_round(lay["l1_w"].T)                # same bf16 weights as kernel
        w2f = _bf16_round(lay["l2_w"].T)
        ff = np.maximum(h1 @ w1f + lay["l1_b"], 0.0) @ w2f + lay["l2_b"]
        x = _ln_ref(h1 + ff, lay["g2"], lay["be2"])
    out = x @ raw["lin_w"].T + raw["lin_b"]
    return out.reshape(BATCH, SEQ, VOCAB).astype(np.float32)


# ----------------------------- main ------------------------------------------
if __name__ == "__main__":
    key = jax.random.PRNGKey(0)
    pkey, tkey = jax.random.split(key)
    params, raw = init_params(pkey)
    tokens = jax.random.randint(tkey, (BATCH, SEQ), 0, VOCAB, dtype=jnp.int32)

    out = jax.block_until_ready(transformer_forward(tokens, params))

    assert out.shape == (BATCH, SEQ, VOCAB), out.shape
    assert out.dtype == jnp.float32
    assert bool(jnp.all(jnp.isfinite(out)))

    ref = reference_forward(tokens, raw)
    max_err = float(jnp.max(jnp.abs(out - ref)))
    # loose tolerance: bf16 attention/FFN matmuls + approx softmax reciprocal
    assert max_err < 5e-2, f"max abs error vs reference: {max_err}"

    print("KERNEL_OK")
</pallas_src>

<mosaic_0001>
module attributes {stable_mosaic.version = 11 : i64} {
  func.func @transformer_kernel(%arg0: i32, %arg1: memref<16x1xi32, #tpu.memory_space<vmem>>, %arg2: memref<120x64xf32, #tpu.memory_space<vmem>>, %arg3: memref<1x4x32x32xf32, #tpu.memory_space<vmem>>, %arg4: memref<1x10x2048xf32, #tpu.memory_space<vmem>>, %arg5: memref<1x32x2048xbf16, #tpu.memory_space<vmem>>, %arg6: memref<1x2048x32xbf16, #tpu.memory_space<vmem>>, %arg7: memref<16x16xf32, #tpu.memory_space<vmem>>, %arg8: memref<16x32xf32, #tpu.memory_space<vmem>>) attributes {dimension_semantics = [#tpu.dimension_semantics<arbitrary>], iteration_bounds = array<i64: 2>, scalar_prefetch = 0 : i64, scratch_operands = 1 : i64, tpu.core_type = #tpu.core_type<tc>, window_params = [{pipeline_mode = #tpu.pipeline_mode<synchronous>, transform_indices = @transform_0, window_bounds = array<i64: 16, 1>}, {pipeline_mode = #tpu.pipeline_mode<synchronous>, transform_indices = @transform_1, window_bounds = array<i64: 120, 64>}, {transform_indices = @transform_2, window_bounds = array<i64: 1, 4, 32, 32>}, {transform_indices = @transform_3, window_bounds = array<i64: 1, 10, 2048>}, {transform_indices = @transform_4, window_bounds = array<i64: 1, 32, 2048>}, {transform_indices = @transform_5, window_bounds = array<i64: 1, 2048, 32>}, {pipeline_mode = #tpu.pipeline_mode<synchronous>, transform_indices = @transform_6, window_bounds = array<i64: 16, 16>}]} {
    %c0_i32 = arith.constant 0 : i32
    %0 = arith.cmpi eq, %arg0, %c0_i32 : i32
    %1 = arith.extui %0 : i1 to i32
    %c0_i32_0 = arith.constant 0 : i32
    %2 = arith.cmpi ne, %1, %c0_i32_0 : i32
    scf.if %2 {
      %c0_109 = arith.constant 0 : index
      %c0_110 = arith.constant 0 : index
      %199 = vector.load %arg1[%c0_109, %c0_110] : memref<16x1xi32, #tpu.memory_space<vmem>>, vector<16x1xi32>
      %200 = tpu.iota {dimensions = array<i32: 1>} : vector<16x16xi32>
      %201 = vector.broadcast %199 : vector<16x1xi32> to vector<16x16xi32>
      %202 = arith.cmpi eq, %201, %200 : vector<16x16xi32>
      %203 = arith.extui %202 : vector<16x16xi1> to vector<16x16xi32>
      %204 = arith.sitofp %203 : vector<16x16xi32> to vector<16x16xf32>
      %c64 = arith.constant 64 : index
      %c0_111 = arith.constant 0 : index
      %205 = vector.load %arg2[%c64, %c0_111] : memref<120x64xf32, #tpu.memory_space<vmem>>, vector<16x32xf32>
      %cst_112 = arith.constant dense<0.000000e+00> : vector<16x32xf32>
      %206 = tpu.matmul %204, %205, %cst_112 {dimension_numbers = #tpu.dot_dimension_numbers<[1], [0], [0], [1], [0, 0, 1, 1], [], []>} : vector<16x16xf32>, vector<16x32xf32>, vector<16x32xf32> -> vector<16x32xf32>
      %c0_113 = arith.constant 0 : index
      %c0_114 = arith.constant 0 : index
      %207 = vector.load %arg8[%c0_113, %c0_114] : memref<16x32xf32, #tpu.memory_space<vmem>>, vector<16x32xf32>
      tpu.vector_store %arg8[%c0_113, %c0_114], %206 {strides = array<i32>} : memref<16x32xf32, #tpu.memory_space<vmem>>, vector<16x32xf32>,
    } else {
    }
    %c0 = arith.constant 0 : index
    %c0_1 = arith.constant 0 : index
    %3 = vector.load %arg8[%c0, %c0_1] : memref<16x32xf32, #tpu.memory_space<vmem>>, vector<16x32xf32>
    %c0_2 = arith.constant 0 : index
    %c0_3 = arith.constant 0 : index
    %c0_4 = arith.constant 0 : index
    %c0_5 = arith.constant 0 : index
    %4 = vector.load %arg3[%c0_2, %c0_3, %c0_4, %c0_5] : memref<1x4x32x32xf32, #tpu.memory_space<vmem>>, vector<1x1x32x32xf32>
    %5 = vector.shape_cast %4 : vector<1x1x32x32xf32> to vector<32x32xf32>
    %c0_6 = arith.constant 0 : index
    %c1 = arith.constant 1 : index
    %c0_7 = arith.constant 0 : index
    %c0_8 = arith.constant 0 : index
    %6 = vector.load %arg3[%c0_6, %c1, %c0_7, %c0_8] : memref<1x4x32x32xf32, #tpu.memory_space<vmem>>, vector<1x1x32x32xf32>
    %7 = vector.shape_cast %6 : vector<1x1x32x32xf32> to vector<32x32xf32>
    %c0_9 = arith.constant 0 : index
    %c2 = arith.constant 2 : index
    %c0_10 = arith.constant 0 : index
    %c0_11 = arith.constant 0 : index
    %8 = vector.load %arg3[%c0_9, %c2, %c0_10, %c0_11] : memref<1x4x32x32xf32, #tpu.memory_space<vmem>>, vector<1x1x32x32xf32>
    %9 = vector.shape_cast %8 : vector<1x1x32x32xf32> to vector<32x32xf32>
    %c0_12 = arith.constant 0 : index
    %c3 = arith.constant 3 : index
    %c0_13 = arith.constant 0 : index
    %c0_14 = arith.constant 0 : index
    %10 = vector.load %arg3[%c0_12, %c3, %c0_13, %c0_14] : memref<1x4x32x32xf32, #tpu.memory_space<vmem>>, vector<1x1x32x32xf32>
    %11 = vector.shape_cast %10 : vector<1x1x32x32xf32> to vector<32x32xf32>
    %c0_15 = arith.constant 0 : index
    %c1_16 = arith.constant 1 : index
    %c0_17 = arith.constant 0 : index
    %12 = vector.load %arg4[%c0_15, %c1_16, %c0_17] : memref<1x10x2048xf32, #tpu.memory_space<vmem>>, vector<1x1x32xf32>
    %13 = vector.shape_cast %12 : vector<1x1x32xf32> to vector<1x32xf32>
    %c0_18 = arith.constant 0 : index
    %c2_19 = arith.constant 2 : index
    %c0_20 = arith.constant 0 : index
    %14 = vector.load %arg4[%c0_18, %c2_19, %c0_20] : memref<1x10x2048xf32, #tpu.memory_space<vmem>>, vector<1x1x32xf32>
    %15 = vector.shape_cast %14 : vector<1x1x32xf32> to vector<1x32xf32>
    %c0_21 = arith.constant 0 : index
    %c3_22 = arith.constant 3 : index
    %c0_23 = arith.constant 0 : index
    %16 = vector.load %arg4[%c0_21, %c3_22, %c0_23] : memref<1x10x2048xf32, #tpu.memory_space<vmem>>, vector<1x1x32xf32>
    %17 = vector.shape_cast %16 : vector<1x1x32xf32> to vector<1x32xf32>
    %c0_24 = arith.constant 0 : index
    %c4 = arith.constant 4 : index
    %c0_25 = arith.constant 0 : index
    %18 = vector.load %arg4[%c0_24, %c4, %c0_25] : memref<1x10x2048xf32, #tpu.memory_space<vmem>>, vector<1x1x32xf32>
    %19 = vector.shape_cast %18 : vector<1x1x32xf32> to vector<1x32xf32>
    %cst = arith.constant dense<0.000000e+00> : vector<16x32xf32>
    %20 = tpu.matmul %3, %5, %cst {dimension_numbers = #tpu.dot_dimension_numbers<[1], [0], [0], [1], [0, 0, 1, 1], [], []>} : vector<16x32xf32>, vector<32x32xf32>, vector<16x32xf32> -> vector<16x32xf32>
    %21 = vector.broadcast %13 : vector<1x32xf32> to vector<16x32xf32>
    %22 = arith.addf %20, %21 : vector<16x32xf32>
    %cst_26 = arith.constant 0.353553385 : f32
    %23 = vector.broadcast %cst_26 : f32 to vector<16x32xf32>
    %24 = arith.mulf %22, %23 : vector<16x32xf32>
    %cst_27 = arith.constant dense<0.000000e+00> : vector<16x32xf32>
    %25 = tpu.matmul %3, %7, %cst_27 {dimension_numbers = #tpu.dot_dimension_numbers<[1], [0], [0], [1], [0, 0, 1, 1], [], []>} : vector<16x32xf32>, vector<32x32xf32>, vector<16x32xf32> -> vector<16x32xf32>
    %26 = vector.broadcast %15 : vector<1x32xf32> to vector<16x32xf32>
    %27 = arith.addf %25, %26 : vector<16x32xf32>
    %cst_28 = arith.constant dense<0.000000e+00> : vector<16x32xf32>
    %28 = tpu.matmul %3, %9, %cst_28 {dimension_numbers = #tpu.dot_dimension_numbers<[1], [0], [0], [1], [0, 0, 1, 1], [], []>} : vector<16x32xf32>, vector<32x32xf32>, vector<16x32xf32> -> vector<16x32xf32>
    %29 = vector.broadcast %17 : vector<1x32xf32> to vector<16x32xf32>
    %30 = arith.addf %28, %29 : vector<16x32xf32>
    %31 = vector.extract_strided_slice %24 {offsets = [0, 0], sizes = [16, 8], strides = [1, 1]} : vector<16x32xf32> to vector<16x8xf32>
    %32 = vector.extract_strided_slice %24 {offsets = [0, 8], sizes = [16, 8], strides = [1, 1]} : vector<16x32xf32> to vector<16x8xf32>
    %33 = vector.extract_strided_slice %24 {offsets = [0, 16], sizes = [16, 8], strides = [1, 1]} : vector<16x32xf32> to vector<16x8xf32>
    %34 = vector.extract_strided_slice %24 {offsets = [0, 24], sizes = [16, 8], strides = [1, 1]} : vector<16x32xf32> to vector<16x8xf32>
    %35 = tpu.concatenate %31, %32, %33, %34 in 0 : vector<16x8xf32>, vector<16x8xf32>, vector<16x8xf32>, vector<16x8xf32> -> vector<64x8xf32>
    %36 = arith.truncf %35 : vector<64x8xf32> to vector<64x8xbf16>
    %37 = vector.extract_strided_slice %27 {offsets = [0, 0], sizes = [16, 8], strides = [1, 1]} : vector<16x32xf32> to vector<16x8xf32>
    %38 = vector.extract_strided_slice %27 {offsets = [0, 8], sizes = [16, 8], strides = [1, 1]} : vector<16x32xf32> to vector<16x8xf32>
    %39 = vector.extract_strided_slice %27 {offsets = [0, 16], sizes = [16, 8], strides = [1, 1]} : vector<16x32xf32> to vector<16x8xf32>
    %40 = vector.extract_strided_slice %27 {offsets = [0, 24], sizes = [16, 8], strides = [1, 1]} : vector<16x32xf32> to vector<16x8xf32>
    %41 = tpu.concatenate %37, %38, %39, %40 in 0 : vector<16x8xf32>, vector<16x8xf32>, vector<16x8xf32>, vector<16x8xf32> -> vector<64x8xf32>
    %42 = arith.truncf %41 : vector<64x8xf32> to vector<64x8xbf16>
    %43 = vector.extract_strided_slice %30 {offsets = [0, 0], sizes = [16, 8], strides = [1, 1]} : vector<16x32xf32> to vector<16x8xf32>
    %44 = vector.extract_strided_slice %30 {offsets = [0, 8], sizes = [16, 8], strides = [1, 1]} : vector<16x32xf32> to vector<16x8xf32>
    %45 = vector.extract_strided_slice %30 {offsets = [0, 16], sizes = [16, 8], strides = [1, 1]} : vector<16x32xf32> to vector<16x8xf32>
    %46 = vector.extract_strided_slice %30 {offsets = [0, 24], sizes = [16, 8], strides = [1, 1]} : vector<16x32xf32> to vector<16x8xf32>
    %47 = tpu.concatenate %43, %44, %45, %46 in 0 : vector<16x8xf32>, vector<16x8xf32>, vector<16x8xf32>, vector<16x8xf32> -> vector<64x8xf32>
    %48 = arith.truncf %47 : vector<64x8xf32> to vector<64x8xbf16>
    %cst_29 = arith.constant dense<0.000000e+00> : vector<64x64xf32>
    %49 = tpu.matmul %36, %42, %cst_29 {dimension_numbers = #tpu.dot_dimension_numbers<[1], [1], [0], [0], [0, 0, 1, 0], [], []>} : vector<64x8xbf16>, vector<64x8xbf16>, vector<64x64xf32> -> vector<64x64xf32>
    %c0_30 = arith.constant 0 : index
    %c0_31 = arith.constant 0 : index
    %50 = vector.load %arg2[%c0_30, %c0_31] : memref<120x64xf32, #tpu.memory_space<vmem>>, vector<64x64xf32>
    %51 = arith.addf %49, %50 : vector<64x64xf32>
    %cst_32 = arith.constant dense<0xFF800000> : vector<64xf32>
    %52 = vector.multi_reduction <maximumf>, %51, %cst_32 [1] : vector<64x64xf32> to vector<64xf32>
    %53 = vector.shape_cast %52 : vector<64xf32> to vector<64x1xf32>
    %54 = vector.broadcast %53 : vector<64x1xf32> to vector<64x64xf32>
    %55 = arith.subf %51, %54 : vector<64x64xf32>
    %56 = math.exp %55 : vector<64x64xf32>
    %cst_33 = arith.constant dense<0.000000e+00> : vector<64xf32>
    %57 = vector.multi_reduction <add>, %56, %cst_33 [1] : vector<64x64xf32> to vector<64xf32>
    %58 = vector.shape_cast %57 : vector<64xf32> to vector<64x1xf32>
    %59 = tpu.reciprocal %58 {approx = true} : vector<64x1xf32> -> vector<64x1xf32>
    %60 = vector.broadcast %59 : vector<64x1xf32> to vector<64x64xf32>
    %61 = arith.mulf %56, %60 : vector<64x64xf32>
    %62 = arith.truncf %61 : vector<64x64xf32> to vector<64x64xbf16>
    %cst_34 = arith.constant dense<0.000000e+00> : vector<64x8xf32>
    %63 = tpu.matmul %62, %48, %cst_34 {dimension_numbers = #tpu.dot_dimension_numbers<[1], [0], [0], [1], [0, 0, 1, 1], [], []>} : vector<64x64xbf16>, vector<64x8xbf16>, vector<64x8xf32> -> vector<64x8xf32>
    %cst_35 = arith.constant 0.000000e+00 : f32
    %64 = vector.broadcast %cst_35 : f32 to vector<16x32xf32>
    %65 = vector.extract_strided_slice %63 {offsets = [0, 0], sizes = [16, 8], strides = [1, 1]} : vector<64x8xf32> to vector<16x8xf32>
    %66 = vector.extract_strided_slice %11 {offsets = [0, 0], sizes = [8, 32], strides = [1, 1]} : vector<32x32xf32> to vector<8x32xf32>
    %cst_36 = arith.constant dense<0.000000e+00> : vector<16x32xf32>
    %67 = tpu.matmul %65, %66, %cst_36 {dimension_numbers = #tpu.dot_dimension_numbers<[1], [0], [0], [1], [0, 0, 1, 1], [], []>} : vector<16x8xf32>, vector<8x32xf32>, vector<16x32xf32> -> vector<16x32xf32>
    %68 = arith.addf %64, %67 : vector<16x32xf32>
    %69 = vector.extract_strided_slice %63 {offsets = [16, 0], sizes = [16, 8], strides = [1, 1]} : vector<64x8xf32> to vector<16x8xf32>
    %70 = vector.extract_strided_slice %11 {offsets = [8, 0], sizes = [8, 32], strides = [1, 1]} : vector<32x32xf32> to vector<8x32xf32>
    %cst_37 = arith.constant dense<0.000000e+00> : vector<16x32xf32>
    %71 = tpu.matmul %69, %70, %cst_37 {dimension_numbers = #tpu.dot_dimension_numbers<[1], [0], [0], [1], [0, 0, 1, 1], [], []>} : vector<16x8xf32>, vector<8x32xf32>, vector<16x32xf32> -> vector<16x32xf32>
    %72 = arith.addf %68, %71 : vector<16x32xf32>
    %73 = vector.extract_strided_slice %63 {offsets = [32, 0], sizes = [16, 8], strides = [1, 1]} : vector<64x8xf32> to vector<16x8xf32>
    %74 = vector.extract_strided_slice %11 {offsets = [16, 0], sizes = [8, 32], strides = [1, 1]} : vector<32x32xf32> to vector<8x32xf32>
    %cst_38 = arith.constant dense<0.000000e+00> : vector<16x32xf32>
    %75 = tpu.matmul %73, %74, %cst_38 {dimension_numbers = #tpu.dot_dimension_numbers<[1], [0], [0], [1], [0, 0, 1, 1], [], []>} : vector<16x8xf32>, vector<8x32xf32>, vector<16x32xf32> -> vector<16x32xf32>
    %76 = arith.addf %72, %75 : vector<16x32xf32>
    %77 = vector.extract_strided_slice %63 {offsets = [48, 0], sizes = [16, 8], strides = [1, 1]} : vector<64x8xf32> to vector<16x8xf32>
    %78 = vector.extract_strided_slice %11 {offsets = [24, 0], sizes = [8, 32], strides = [1, 1]} : vector<32x32xf32> to vector<8x32xf32>
    %cst_39 = arith.constant dense<0.000000e+00> : vector<16x32xf32>
    %79 = tpu.matmul %77, %78, %cst_39 {dimension_numbers = #tpu.dot_dimension_numbers<[1], [0], [0], [1], [0, 0, 1, 1], [], []>} : vector<16x8xf32>, vector<8x32xf32>, vector<16x32xf32> -> vector<16x32xf32>
    %80 = arith.addf %76, %79 : vector<16x32xf32>
    %81 = vector.broadcast %19 : vector<1x32xf32> to vector<16x32xf32>
    %82 = arith.addf %80, %81 : vector<16x32xf32>
    %83 = arith.addf %3, %82 : vector<16x32xf32>
    %c0_40 = arith.constant 0 : index
    %c5 = arith.constant 5 : index
    %c0_41 = arith.constant 0 : index
    %84 = vector.load %arg4[%c0_40, %c5, %c0_41] : memref<1x10x2048xf32, #tpu.memory_space<vmem>>, vector<1x1x32xf32>
    %85 = vector.shape_cast %84 : vector<1x1x32xf32> to vector<1x32xf32>
    %c0_42 = arith.constant 0 : index
    %c6 = arith.constant 6 : index
    %c0_43 = arith.constant 0 : index
    %86 = vector.load %arg4[%c0_42, %c6, %c0_43] : memref<1x10x2048xf32, #tpu.memory_space<vmem>>, vector<1x1x32xf32>
    %87 = vector.shape_cast %86 : vector<1x1x32xf32> to vector<1x32xf32>
    %cst_44 = arith.constant dense<0.000000e+00> : vector<16xf32>
    %88 = vector.multi_reduction <add>, %83, %cst_44 [1] : vector<16x32xf32> to vector<16xf32>
    %89 = vector.shape_cast %88 : vector<16xf32> to vector<16x1xf32>
    %cst_45 = arith.constant 3.200000e+01 : f32
    %90 = vector.broadcast %cst_45 : f32 to vector<16x1xf32>
    %91 = arith.divf %89, %90 : vector<16x1xf32>
    %92 = vector.broadcast %91 : vector<16x1xf32> to vector<16x32xf32>
    %93 = arith.subf %83, %92 : vector<16x32xf32>
    %94 = arith.mulf %93, %93 : vector<16x32xf32>
    %cst_46 = arith.constant dense<0.000000e+00> : vector<16xf32>
    %95 = vector.multi_reduction <add>, %94, %cst_46 [1] : vector<16x32xf32> to vector<16xf32>
    %96 = vector.shape_cast %95 : vector<16xf32> to vector<16x1xf32>
    %cst_47 = arith.constant 3.200000e+01 : f32
    %97 = vector.broadcast %cst_47 : f32 to vector<16x1xf32>
    %98 = arith.divf %96, %97 : vector<16x1xf32>
    %cst_48 = arith.constant 9.99999974E-6 : f32
    %99 = vector.broadcast %cst_48 : f32 to vector<16x1xf32>
    %100 = arith.addf %98, %99 : vector<16x1xf32>
    %101 = math.rsqrt %100 : vector<16x1xf32>
    %102 = vector.broadcast %101 : vector<16x1xf32> to vector<16x32xf32>
    %103 = arith.mulf %93, %102 : vector<16x32xf32>
    %104 = vector.broadcast %85 : vector<1x32xf32> to vector<16x32xf32>
    %105 = arith.mulf %103, %104 : vector<16x32xf32>
    %106 = vector.broadcast %87 : vector<1x32xf32> to vector<16x32xf32>
    %107 = arith.addf %105, %106 : vector<16x32xf32>
    %108 = arith.truncf %107 : vector<16x32xf32> to vector<16x32xbf16>
    %cst_49 = arith.constant 0.000000e+00 : f32
    %109 = vector.broadcast %cst_49 : f32 to vector<16x32xf32>
    %c0_50 = arith.constant 0 : index
    %c0_51 = arith.constant 0 : index
    %c0_52 = arith.constant 0 : index
    %110 = vector.load %arg5[%c0_50, %c0_51, %c0_52] : memref<1x32x2048xbf16, #tpu.memory_space<vmem>>, vector<1x32x512xbf16>
    %111 = vector.shape_cast %110 : vector<1x32x512xbf16> to vector<32x512xbf16>
    %cst_53 = arith.constant dense<0.000000e+00> : vector<16x512xf32>
    %112 = tpu.matmul %108, %111, %cst_53 {dimension_numbers = #tpu.dot_dimension_numbers<[1], [0], [0], [1], [0, 0, 1, 1], [], []>} : vector<16x32xbf16>, vector<32x512xbf16>, vector<16x512xf32> -> vector<16x512xf32>
    %c0_54 = arith.constant 0 : index
    %c0_55 = arith.constant 0 : index
    %c0_56 = arith.constant 0 : index
    %113 = vector.load %arg4[%c0_54, %c0_55, %c0_56] : memref<1x10x2048xf32, #tpu.memory_space<vmem>>, vector<1x1x512xf32>
    %114 = vector.shape_cast %113 : vector<1x1x512xf32> to vector<1x512xf32>
    %115 = vector.broadcast %114 : vector<1x512xf32> to vector<16x512xf32>
    %116 = arith.addf %112, %115 : vector<16x512xf32>
    %cst_57 = arith.constant 0.000000e+00 : f32
    %117 = vector.broadcast %cst_57 : f32 to vector<16x512xf32>
    %118 = arith.maximumf %116, %117 : vector<16x512xf32>
    %119 = arith.truncf %118 : vector<16x512xf32> to vector<16x512xbf16>
    %c0_58 = arith.constant 0 : index
    %c0_59 = arith.constant 0 : index
    %c0_60 = arith.constant 0 : index
    %120 = vector.load %arg6[%c0_58, %c0_59, %c0_60] : memref<1x2048x32xbf16, #tpu.memory_space<vmem>>, vector<1x512x32xbf16>
    %121 = vector.shape_cast %120 : vector<1x512x32xbf16> to vector<512x32xbf16>
    %cst_61 = arith.constant dense<0.000000e+00> : vector<16x32xf32>
    %122 = tpu.matmul %119, %121, %cst_61 {dimension_numbers = #tpu.dot_dimension_numbers<[1], [0], [0], [1], [0, 0, 1, 1], [], []>} : vector<16x512xbf16>, vector<512x32xbf16>, vector<16x32xf32> -> vector<16x32xf32>
    %123 = arith.addf %109, %122 : vector<16x32xf32>
    %c0_62 = arith.constant 0 : index
    %c0_63 = arith.constant 0 : index
    %c512 = arith.constant 512 : index
    %124 = vector.load %arg5[%c0_62, %c0_63, %c512] : memref<1x32x2048xbf16, #tpu.memory_space<vmem>>, vector<1x32x512xbf16>
    %125 = vector.shape_cast %124 : vector<1x32x512xbf16> to vector<32x512xbf16>
    %cst_64 = arith.constant dense<0.000000e+00> : vector<16x512xf32>
    %126 = tpu.matmul %108, %125, %cst_64 {dimension_numbers = #tpu.dot_dimension_numbers<[1], [0], [0], [1], [0, 0, 1, 1], [], []>} : vector<16x32xbf16>, vector<32x512xbf16>, vector<16x512xf32> -> vector<16x512xf32>
    %c0_65 = arith.constant 0 : index
    %c0_66 = arith.constant 0 : index
    %c512_67 = arith.constant 512 : index
    %127 = vector.load %arg4[%c0_65, %c0_66, %c512_67] : memref<1x10x2048xf32, #tpu.memory_space<vmem>>, vector<1x1x512xf32>
    %128 = vector.shape_cast %127 : vector<1x1x512xf32> to vector<1x512xf32>
    %129 = vector.broadcast %128 : vector<1x512xf32> to vector<16x512xf32>
    %130 = arith.addf %126, %129 : vector<16x512xf32>
    %cst_68 = arith.constant 0.000000e+00 : f32
    %131 = vector.broadcast %cst_68 : f32 to vector<16x512xf32>
    %132 = arith.maximumf %130, %131 : vector<16x512xf32>
    %133 = arith.truncf %132 : vector<16x512xf32> to vector<16x512xbf16>
    %c0_69 = arith.constant 0 : index
    %c512_70 = arith.constant 512 : index
    %c0_71 = arith.constant 0 : index
    %134 = vector.load %arg6[%c0_69, %c512_70, %c0_71] : memref<1x2048x32xbf16, #tpu.memory_space<vmem>>, vector<1x512x32xbf16>
    %135 = vector.shape_cast %134 : vector<1x512x32xbf16> to vector<512x32xbf16>
    %cst_72 = arith.constant dense<0.000000e+00> : vector<16x32xf32>
    %136 = tpu.matmul %133, %135, %cst_72 {dimension_numbers = #tpu.dot_dimension_numbers<[1], [0], [0], [1], [0, 0, 1, 1], [], []>} : vector<16x512xbf16>, vector<512x32xbf16>, vector<16x32xf32> -> vector<16x32xf32>
    %137 = arith.addf %123, %136 : vector<16x32xf32>
    %c0_73 = arith.constant 0 : index
    %c0_74 = arith.constant 0 : index
    %c1024 = arith.constant 1024 : index
    %138 = vector.load %arg5[%c0_73, %c0_74, %c1024] : memref<1x32x2048xbf16, #tpu.memory_space<vmem>>, vector<1x32x512xbf16>
    %139 = vector.shape_cast %138 : vector<1x32x512xbf16> to vector<32x512xbf16>
    %cst_75 = arith.constant dense<0.000000e+00> : vector<16x512xf32>
    %140 = tpu.matmul %108, %139, %cst_75 {dimension_numbers = #tpu.dot_dimension_numbers<[1], [0], [0], [1], [0, 0, 1, 1], [], []>} : vector<16x32xbf16>, vector<32x512xbf16>, vector<16x512xf32> -> vector<16x512xf32>
    %c0_76 = arith.constant 0 : index
    %c0_77 = arith.constant 0 : index
    %c1024_78 = arith.constant 1024 : index
    %141 = vector.load %arg4[%c0_76, %c0_77, %c1024_78] : memref<1x10x2048xf32, #tpu.memory_space<vmem>>, vector<1x1x512xf32>
    %142 = vector.shape_cast %141 : vector<1x1x512xf32> to vector<1x512xf32>
    %143 = vector.broadcast %142 : vector<1x512xf32> to vector<16x512xf32>
    %144 = arith.addf %140, %143 : vector<16x512xf32>
    %cst_79 = arith.constant 0.000000e+00 : f32
    %145 = vector.broadcast %cst_79 : f32 to vector<16x512xf32>
    %146 = arith.maximumf %144, %145 : vector<16x512xf32>
    %147 = arith.truncf %146 : vector<16x512xf32> to vector<16x512xbf16>
    %c0_80 = arith.constant 0 : index
    %c1024_81 = arith.constant 1024 : index
    %c0_82 = arith.constant 0 : index
    %148 = vector.load %arg6[%c0_80, %c1024_81, %c0_82] : memref<1x2048x32xbf16, #tpu.memory_space<vmem>>, vector<1x512x32xbf16>
    %149 = vector.shape_cast %148 : vector<1x512x32xbf16> to vector<512x32xbf16>
    %cst_83 = arith.constant dense<0.000000e+00> : vector<16x32xf32>
    %150 = tpu.matmul %147, %149, %cst_83 {dimension_numbers = #tpu.dot_dimension_numbers<[1], [0], [0], [1], [0, 0, 1, 1], [], []>} : vector<16x512xbf16>, vector<512x32xbf16>, vector<16x32xf32> -> vector<16x32xf32>
    %151 = arith.addf %137, %150 : vector<16x32xf32>
    %c0_84 = arith.constant 0 : index
    %c0_85 = arith.constant 0 : index
    %c1536 = arith.constant 1536 : index
    %152 = vector.load %arg5[%c0_84, %c0_85, %c1536] : memref<1x32x2048xbf16, #tpu.memory_space<vmem>>, vector<1x32x512xbf16>
    %153 = vector.shape_cast %152 : vector<1x32x512xbf16> to vector<32x512xbf16>
    %cst_86 = arith.constant dense<0.000000e+00> : vector<16x512xf32>
    %154 = tpu.matmul %108, %153, %cst_86 {dimension_numbers = #tpu.dot_dimension_numbers<[1], [0], [0], [1], [0, 0, 1, 1], [], []>} : vector<16x32xbf16>, vector<32x512xbf16>, vector<16x512xf32> -> vector<16x512xf32>
    %c0_87 = arith.constant 0 : index
    %c0_88 = arith.constant 0 : index
    %c1536_89 = arith.constant 1536 : index
    %155 = vector.load %arg4[%c0_87, %c0_88, %c1536_89] : memref<1x10x2048xf32, #tpu.memory_space<vmem>>, vector<1x1x512xf32>
    %156 = vector.shape_cast %155 : vector<1x1x512xf32> to vector<1x512xf32>
    %157 = vector.broadcast %156 : vector<1x512xf32> to vector<16x512xf32>
    %158 = arith.addf %154, %157 : vector<16x512xf32>
    %cst_90 = arith.constant 0.000000e+00 : f32
    %159 = vector.broadcast %cst_90 : f32 to vector<16x512xf32>
    %160 = arith.maximumf %158, %159 : vector<16x512xf32>
    %161 = arith.truncf %160 : vector<16x512xf32> to vector<16x512xbf16>
    %c0_91 = arith.constant 0 : index
    %c1536_92 = arith.constant 1536 : index
    %c0_93 = arith.constant 0 : index
    %162 = vector.load %arg6[%c0_91, %c1536_92, %c0_93] : memref<1x2048x32xbf16, #tpu.memory_space<vmem>>, vector<1x512x32xbf16>
    %163 = vector.shape_cast %162 : vector<1x512x32xbf16> to vector<512x32xbf16>
    %cst_94 = arith.constant dense<0.000000e+00> : vector<16x32xf32>
    %164 = tpu.matmul %161, %163, %cst_94 {dimension_numbers = #tpu.dot_dimension_numbers<[1], [0], [0], [1], [0, 0, 1, 1], [], []>} : vector<16x512xbf16>, vector<512x32xbf16>, vector<16x32xf32> -> vector<16x32xf32>
    %165 = arith.addf %151, %164 : vector<16x32xf32>
    %c0_95 = arith.constant 0 : index
    %c7 = arith.constant 7 : index
    %c0_96 = arith.constant 0 : index
    %166 = vector.load %arg4[%c0_95, %c7, %c0_96] : memref<1x10x2048xf32, #tpu.memory_space<vmem>>, vector<1x1x32xf32>
    %167 = vector.shape_cast %166 : vector<1x1x32xf32> to vector<1x32xf32>
    %168 = vector.broadcast %167 : vector<1x32xf32> to vector<16x32xf32>
    %169 = arith.addf %165, %168 : vector<16x32xf32>
    %170 = arith.addf %107, %169 : vector<16x32xf32>
    %c0_97 = arith.constant 0 : index
    %c8 = arith.constant 8 : index
    %c0_98 = arith.constant 0 : index
    %171 = vector.load %arg4[%c0_97, %c8, %c0_98] : memref<1x10x2048xf32, #tpu.memory_space<vmem>>, vector<1x1x32xf32>
    %172 = vector.shape_cast %171 : vector<1x1x32xf32> to vector<1x32xf32>
    %c0_99 = arith.constant 0 : index
    %c9 = arith.constant 9 : index
    %c0_100 = arith.constant 0 : index
    %173 = vector.load %arg4[%c0_99, %c9, %c0_100] : memref<1x10x2048xf32, #tpu.memory_space<vmem>>, vector<1x1x32xf32>
    %174 = vector.shape_cast %173 : vector<1x1x32xf32> to vector<1x32xf32>
    %cst_101 = arith.constant dense<0.000000e+00> : vector<16xf32>
    %175 = vector.multi_reduction <add>, %170, %cst_101 [1] : vector<16x32xf32> to vector<16xf32>
    %176 = vector.shape_cast %175 : vector<16xf32> to vector<16x1xf32>
    %cst_102 = arith.constant 3.200000e+01 : f32
    %177 = vector.broadcast %cst_102 : f32 to vector<16x1xf32>
    %178 = arith.divf %176, %177 : vector<16x1xf32>
    %179 = vector.broadcast %178 : vector<16x1xf32> to vector<16x32xf32>
    %180 = arith.subf %170, %179 : vector<16x32xf32>
    %181 = arith.mulf %180, %180 : vector<16x32xf32>
    %cst_103 = arith.constant dense<0.000000e+00> : vector<16xf32>
    %182 = vector.multi_reduction <add>, %181, %cst_103 [1] : vector<16x32xf32> to vector<16xf32>
    %183 = vector.shape_cast %182 : vector<16xf32> to vector<16x1xf32>
    %cst_104 = arith.constant 3.200000e+01 : f32
    %184 = vector.broadcast %cst_104 : f32 to vector<16x1xf32>
    %185 = arith.divf %183, %184 : vector<16x1xf32>
    %cst_105 = arith.constant 9.99999974E-6 : f32
    %186 = vector.broadcast %cst_105 : f32 to vector<16x1xf32>
    %187 = arith.addf %185, %186 : vector<16x1xf32>
    %188 = math.rsqrt %187 : vector<16x1xf32>
    %189 = vector.broadcast %188 : vector<16x1xf32> to vector<16x32xf32>
    %190 = arith.mulf %180, %189 : vector<16x32xf32>
    %191 = vector.broadcast %172 : vector<1x32xf32> to vector<16x32xf32>
    %192 = arith.mulf %190, %191 : vector<16x32xf32>
    %193 = vector.broadcast %174 : vector<1x32xf32> to vector<16x32xf32>
    %194 = arith.addf %192, %193 : vector<16x32xf32>
    %c0_106 = arith.constant 0 : index
    %c0_107 = arith.constant 0 : index
    %195 = vector.load %arg8[%c0_106, %c0_107] : memref<16x32xf32, #tpu.memory_space<vmem>>, vector<16x32xf32>
    tpu.vector_store %arg8[%c0_106, %c0_107], %194 {strides = array<i32>} : memref<16x32xf32, #tpu.memory_space<vmem>>, vector<16x32xf32>,
    %c1_i32 = arith.constant 1 : i32
    %196 = arith.cmpi eq, %arg0, %c1_i32 : i32
    %197 = arith.extui %196 : i1 to i32
    %c0_i32_108 = arith.constant 0 : i32
    %198 = arith.cmpi ne, %197, %c0_i32_108 : i32
    scf.if %198 {
      %c80 = arith.constant 80 : index
      %c0_109 = arith.constant 0 : index
      %199 = vector.load %arg2[%c80, %c0_109] : memref<120x64xf32, #tpu.memory_space<vmem>>, vector<32x16xf32>
      %c112 = arith.constant 112 : index
      %c0_110 = arith.constant 0 : index
      %200 = vector.load %arg2[%c112, %c0_110] : memref<120x64xf32, #tpu.memory_space<vmem>>, vector<1x16xf32>
      %cst_111 = arith.constant dense<0.000000e+00> : vector<16x16xf32>
      %201 = tpu.matmul %194, %199, %cst_111 {dimension_numbers = #tpu.dot_dimension_numbers<[1], [0], [0], [1], [0, 0, 1, 1], [], []>} : vector<16x32xf32>, vector<32x16xf32>, vector<16x16xf32> -> vector<16x16xf32>
      %202 = vector.broadcast %200 : vector<1x16xf32> to vector<16x16xf32>
      %203 = arith.addf %201, %202 : vector<16x16xf32>
      %c0_112 = arith.constant 0 : index
      %c0_113 = arith.constant 0 : index
      %204 = vector.load %arg7[%c0_112, %c0_113] : memref<16x16xf32, #tpu.memory_space<vmem>>, vector<16x16xf32>
      tpu.vector_store %arg7[%c0_112, %c0_113], %203 {strides = array<i32>} : memref<16x16xf32, #tpu.memory_space<vmem>>, vector<16x16xf32>,
    } else {
    }
    return
  }
  func.func @transform_0(%arg0: i32) -> (i32, i32) {
    %c0_i32 = arith.constant 0 : i32
    %c0_i32_0 = arith.constant 0 : i32
    %c0_i32_1 = arith.constant 0 : i32
    return %c0_i32, %c0_i32_0 : i32, i32
  }
  func.func @transform_1(%arg0: i32) -> (i32, i32) {
    %c0_i32 = arith.constant 0 : i32
    %c0_i32_0 = arith.constant 0 : i32
    %c0_i32_1 = arith.constant 0 : i32
    return %c0_i32, %c0_i32_0 : i32, i32
  }
  func.func @transform_2(%arg0: i32) -> (i32, i32, i32, i32) {
    %c0_i32 = arith.constant 0 : i32
    %c0_i32_0 = arith.constant 0 : i32
    %c0_i32_1 = arith.constant 0 : i32
    %c0_i32_2 = arith.constant 0 : i32
    return %arg0, %c0_i32, %c0_i32_0, %c0_i32_1 : i32, i32, i32, i32
  }
  func.func @transform_3(%arg0: i32) -> (i32, i32, i32) {
    %c0_i32 = arith.constant 0 : i32
    %c0_i32_0 = arith.constant 0 : i32
    %c0_i32_1 = arith.constant 0 : i32
    return %arg0, %c0_i32, %c0_i32_0 : i32, i32, i32
  }
  func.func @transform_4(%arg0: i32) -> (i32, i32, i32) {
    %c0_i32 = arith.constant 0 : i32
    %c0_i32_0 = arith.constant 0 : i32
    %c0_i32_1 = arith.constant 0 : i32
    return %arg0, %c0_i32, %c0_i32_0 : i32, i32, i32
  }
  func.func @transform_5(%arg0: i32) -> (i32, i32, i32) {
    %c0_i32 = arith.constant 0 : i32
    %c0_i32_0 = arith.constant 0 : i32
    %c0_i32_1 = arith.constant 0 : i32
    return %arg0, %c0_i32, %c0_i32_0 : i32, i32, i32
  }
  func.func @transform_6(%arg0: i32) -> (i32, i32) {
    %c0_i32 = arith.constant 0 : i32
    %c0_i32_0 = arith.constant 0 : i32
    %c0_i32_1 = arith.constant 0 : i32
    return %c0_i32, %c0_i32_0 : i32, i32
  }
}

</mosaic_0001>

<bundles_post_ra>
// kernel: transformer_forward.1
= control target key start
LH: loop header
LB: loop body
LE: loop exit
PB: predicated region body
PF: predicated region fallthrough
CT: control target
= control target key end

     0   :  { %11 = vsyncpa [#allocation4], 0  ;;  %s3937_s21 = smov 0   ;;  %s4469_s0 = inlined_call_operand.vmem [shape: s32[16,1], index: 0, kind: input, shape index: {}]   ;;  %s4470_s1 = inlined_call_operand.vmem [shape: f32[120,64], index: 1, kind: input, shape index: {}]   ;;  %s4471_s2 = inlined_call_operand.vmem [shape: f32[2,4,32,32], index: 2, kind: input, shape index: {}]   ;;  %s4472_s3 = inlined_call_operand.vmem [shape: f32[2,10,2048], index: 3, kind: input, shape index: {}]   ;;  %s4473_s4 = inlined_call_operand.vmem [shape: bf16[2,32,2048], index: 4, kind: input, shape index: {}]   ;;  %s4474_s5 = inlined_call_operand.vmem [shape: bf16[2,2048,32], index: 5, kind: input, shape index: {}]   ;;  %s4475_s6 = inlined_call_operand.hbm [shape: f32[16,16], index: 6, kind: output, shape index: {}]  }
   0x1 LB: > { %s3943_s22 = sadd.s32 4294967295, %s3891_s21   ;;  %p2857_p0 = scmp.ge.s32.totalorder %s3891_s21, 1  ;;  %s3891_s21 = sphi %s3937_s21, %s17_s21  }
   0x2   : > { %p238_p1 = scmp.lt.s32.totalorder %s3891_s21, 3 }
   0x4   : > { %p239_p2 = pnand %p2857_p0, %p238_p1 }
   0x5   : > { %p278_p3 = scmp.lt.s32.totalorder (!%p239_p2), %s3943_s22, 1  ;;  %p2866_p4 = scmp.ne.s32.totalorder (!%p239_p2), %s3943_s22, 0 }
   0x6   : > { %242 = sbr.rel (%p239_p2) target bundleno = 2637 (0xa4d), region = 44 }
   0xb   : > { %s279_s23 = scalar_select %p278_p3, %s3943_s22, 1 }
   0xc   : > { %302 = sbr.rel (%p2866_p4) target bundleno = 271 (0x10f), region = 48 }
   0xd   : > { %s3571_s24 = sshll.u32 %s279_s23, 7  ;;  %s3572_s25 = sshll.u32 %s279_s23, 8 }
   0xe   : > { %s3952_s28 = scalar_lea.vmem %s4471_s2, %s3571_s24  ;;  %s3957_s7 = scalar_lea.vmem %s4472_s3, %s3572_s25 }
   0xf   : > { %s3962_s10 = scalar_lea.vmem %s4473_s4, %s3572_s25  ;;  %s3574_s11 = sshll.u32 %s279_s23, 10 }
  0x10   : > { %s3967_s14 = scalar_lea.vmem %s4474_s5, %s3574_s11 }
  0x11   : > { %v303_v0 = vld [vmem:[%s4469_s0] sm:$0xff]  ;;  %v320_v1 = vld [vmem:[%s4470_s1 + $0x48] sm:$0xff]  ;;  %v3893_v2 = vmov 0   ;;  %v305_v5 = vlaneseq  ;;  %vm321_vm0 = vcmask 130048   ;;  %v3894_v8 = vmov 0.0  }
  0x12   : > { %3764 = vset.pattern.permute.xlu0 %v3893_v2  ;;  %342 = vmatpush.msra.mxu0 %v320_v1  ;;  %v304_v3 = vld [vmem:[%s4469_s0 + $0x8] sm:$0xff]  ;;  %v319_v4 = vld [vmem:[%s4470_s1 + $0x40] sm:$0xff]  ;;  %vm351_vm3 = vcmask 261120  }
  0x13   : > { %308 = vperm.xlu0 %3764, %v303_v0   ;;  %3735 = vmatpush.msra.mxu1 %v320_v1  ;;  %v306_v6 = vand.u32 127, %v305_v5 }
  0x14   : > { %343 = vmatpush.msra.mxu0 %v319_v4 }
  0x15   : > { %3736 = vmatpush.msra.mxu1 %v319_v4 }
  0x1b   : > { %311 = vperm.xlu0 %3764, %v304_v3  }
  0x85   : > { %v309_v7 = vpop.permute.xlu0 %308 }
  0x86   : > { %vm313_vm1 = vcmp.eq.s32.totalorder %v309_v7, %v306_v6 }
  0x87   : > { %v2867_v9 = vsel %vm313_vm1, 1.0, %v3894_v8 }
  0x88   : > { %2869 = vmatmul.msk.f32.vlgmr.msra.gmra.mxu0 %vm321_vm0, %v2867_v9 }
  0x8d   : > { %v312_v10 = vpop.permute.xlu0 %311 }
  0x8e   : > { %vm314_vm2 = vcmp.eq.s32.totalorder %v312_v10, %v306_v6 }
  0x8f   : > { %v2868_v11 = vsel %vm314_vm2, 1.0, %v3894_v8 }
  0x90   : > { %2870 = vmatmul.msk.f32.vlgmr.msra.gmra.mxu1 %vm321_vm0, %v2868_v11 }
 0x105   : > { %v345_v12 = vpop.f32.mrf.mxu0 }
 0x106   : > { %352 = vst.msk [vmem:[#allocation2] sm:$0xff] %vm351_vm3, %v345_v12 }
 0x10d   : > { %v348_v13 = vpop.f32.mrf.mxu1 }
 0x10e   : > { %353 = vst.msk [vmem:[#allocation2 + $0x8] sm:$0xff] %vm351_vm3, %v348_v13 }
 0x10f PF: > { %v2874_v14 = vld [vmem:[%s3952_s28 + $0x38] sm:$0xff]  ;;  %v2873_v15 = vld [vmem:[%s3952_s28 + $0x30] sm:$0xff]  ;;  %v2872_v16 = vld [vmem:[%s3952_s28 + $0x28] sm:$0xff]  ;;  %vm379_vm4 = vcmask 261120   ;;  %s3895_s25 = smov 120   ;;  %s3896_s26 = smov 104  }
 0x110   : > { %423 = vmatpush.msra.mxu1 %v2874_v14  ;;  %v359_v17 = vld [vmem:[%s3952_s28 + $0x18] sm:$0xff]  ;;  %v358_v18 = vld [vmem:[%s3952_s28 + $0x10] sm:$0xff]  ;;  %v2871_v19 = vld [vmem:[%s3952_s28 + $0x20] sm:$0xff]  ;;  %s3897_s27 = smov 112   ;;  %vm537_vm5 = vcmask 64512   ;;  %vm591_vm6 = vcmask 523264  }
 0x111   : > { %398 = vmatpush.msra.mxu0 %v359_v17  ;;  %v357_v20 = vld [vmem:[%s3952_s28 + $0x8] sm:$0xff]  ;;  %v3989_v21 = vld [vmem:[#allocation2] sm:$0xff]  ;;  %v2878_v24 = vld [vmem:[%s3952_s28 + $0x58] sm:$0xff]  ;;  %p3564_p5 = scmp.ne.s32.totalorder %s3943_s22, 1 }
 0x112   : > { %424 = vmatpush.msra.mxu1 %v2873_v15  ;;  %v356_v22 = vld [vmem:[%s3952_s28] sm:$0xff]  ;;  %v2877_v25 = vld [vmem:[%s3952_s28 + $0x50] sm:$0xff]  ;;  %446 = vmatpush.msra.mxu2 %v2878_v24  ;;  %v2876_v26 = vld [vmem:[%s3952_s28 + $0x48] sm:$0xff] }
 0x113   : > { %399 = vmatpush.msra.mxu0 %v358_v18  ;;  %v2875_v27 = vld [vmem:[%s3952_s28 + $0x40] sm:$0xff] }
 0x114   : > { %425 = vmatpush.msra.mxu1 %v2872_v16  ;;  %447 = vmatpush.msra.mxu2 %v2877_v25  ;;  %v375_v30 = vld [vmem:[%s3957_s7 + $0x1] ss:$0 sm:$0xff]  ;;  %v376_v31 = vld [vmem:[%s3957_s7 + $0x2] ss:$0 sm:$0xff]  ;;  %v377_v1 = vld [vmem:[%s3957_s7 + $0x3] ss:$0 sm:$0xff] }
 0x115   : > { %400 = vmatpush.msra.mxu0 %v357_v20  ;;  %v3996_v23 = vld [vmem:[#allocation2 + $0x8] sm:$0xff]  ;;  %v529_v15 = vld [vmem:[%s4470_s1] sm:$0xff]  ;;  %v531_v25 = vld [vmem:[%s4470_s1 + $0x10] sm:$0xff] }
 0x116   : > { %426 = vmatpush.msra.mxu1 %v2871_v19  ;;  %448 = vmatpush.msra.mxu2 %v2876_v26  ;;  %v530_v19 = vld [vmem:[%s4470_s1 + $0x8] sm:$0xff] }
 0x117   : > { %2885 = vmatmul.msk.f32.vlgmr.msra.gmra.mxu1 %vm379_vm4, %v3989_v21  ;;  %401 = vmatpush.msra.mxu0 %v356_v22 }
 0x118   : > { %2883 = vmatmul.msk.f32.vlgmr.msra.gmra.mxu0 %vm379_vm4, %v3989_v21  ;;  %449 = vmatpush.msra.mxu2 %v2875_v27 }
 0x119   : > { %2887 = vmatmul.msk.f32.vlgmr.msra.gmra.mxu2 %vm379_vm4, %v3989_v21 }
 0x11f   : > { %2886 = vmatmul.msk.f32.gmra.mxu1 %vm379_vm4, %v3996_v23 }
 0x120   : > { %2884 = vmatmul.msk.f32.gmra.mxu0 %vm379_vm4, %v3996_v23 }
 0x121   : > { %2888 = vmatmul.msk.f32.gmra.mxu2 %vm379_vm4, %v3996_v23 }
 0x194   : > { %v428_v28 = vpop.f32.mrf.mxu1 }
 0x195   : > { %v403_v29 = vpop.f32.mrf.mxu0  ;;  %v429_v34 = vadd.f32 %v428_v28, %v376_v31 }
 0x196   : > { %v404_v32 = vadd.f32 %v403_v29, %v375_v30  ;;  %v532_v29 = vld [vmem:[%s4470_s1 + $0x18] sm:$0xff] }
 0x198   : > { %v409_v38 = vmul.f32 0.35355338, %v404_v32 }
 0x19c   : > { %v431_v33 = vpop.f32.mrf.mxu1  ;;  %v451_v0 = vpop.f32.mrf.mxu2 }
 0x19d   : > { %v432_v35 = vadd.f32 %v431_v33, %v376_v31  ;;  %v406_v36 = vpop.f32.mrf.mxu0  ;;  %v4025_v2 = vadd.f32 %v451_v0, %v377_v1 }
 0x19e   : > { %v407_v39 = vadd.f32 %v406_v36, %v375_v30  ;;  %v533_v36 = vld [vmem:[%s4470_s1 + $0x20] sm:$0xff] }
 0x19f   : > { %v3775_v37 = vpack.i.bf16 %v432_v35, %v429_v34  ;;  %v501_v40 = vpack.c.bf16 %v432_v35, %v429_v34 }
 0x1a0   : > { %v410_v41 = vmul.f32 0.35355338, %v407_v39 }
 0x1a1   : > { %3776 = vrot.lane.b32.xlu1 %v3775_v37, %s3895_s25  ;;  %3766 = vrot.lane.b32.xlu0 %v3775_v37, %s3896_s26  ;;  %v551_v59 = vsel %vm537_vm5, %v501_v40, 0 }
 0x1a2   : > { %v3785_v42 = vpack.i.bf16 %v410_v41, %v409_v38  ;;  %v477_v43 = vpack.c.bf16 %v410_v41, %v409_v38  ;;  %v534_v41 = vld [vmem:[%s4470_s1 + $0x28] sm:$0xff] }
 0x1a4   : > { %3786 = vrot.lane.b32.xlu2 %v3785_v42, %s3897_s27  ;;  %v454_v3 = vpop.f32.mrf.mxu2 }
 0x1a5   : > { %v4027_v5 = vadd.f32 %v454_v3, %v377_v1 }
 0x1a7   : > { %v3795_v8 = vpack.i.bf16 %v4027_v5, %v4025_v2  ;;  %v525_v14 = vpack.c.bf16 %v4027_v5, %v4025_v2 }
 0x1a9   : > { %3771 = vrot.lane.b32.xlu0 %v3775_v37, %s3897_s27  ;;  %3781 = vrot.lane.b32.xlu1 %v3785_v42, %s3895_s25 }
 0x1ac   : > { %3791 = vrot.lane.b32.xlu2 %v3785_v42, %s3896_s26 }
 0x1b4   : > { %3796 = vrot.lane.b32.xlu2 %v3795_v8, %s3896_s26 }
 0x1fe   : > { %v3787_v4 = vpop.permute.xlu2 %3786 }
 0x1ff   : > { %v3789_v6 = vunpack.i.h.bf16 %v3787_v4  ;;  %v3788_v7 = vunpack.i.l.bf16 %v3787_v4 }
 0x201   : > { %v479_v9 = vpack.c.bf16 %v3789_v6, %v3788_v7 }
 0x206   : > { %v3792_v10 = vpop.permute.xlu2 %3791 }
 0x207   : > { %v3794_v11 = vunpack.i.h.bf16 %v3792_v10  ;;  %v3793_v12 = vunpack.i.l.bf16 %v3792_v10 }
 0x209   : > { %v480_v13 = vpack.c.bf16 %v3794_v11, %v3793_v12 }
 0x20e   : > { %v3797_v33 = vpop.permute.xlu2 %3796 }
 0x20f   : > { %v3799_v34 = vunpack.i.h.bf16 %v3797_v33  ;;  %v3798_v35 = vunpack.i.l.bf16 %v3797_v33 }
 0x211   : > { %v528_v37 = vpack.c.bf16 %v3799_v34, %v3798_v35 }
 0x213   : > { %v3767_v44 = vpop.permute.xlu0 %3766  ;;  %v3777_v52 = vpop.permute.xlu1 %3776  ;;  %700 = vmatpush.bf16.msrb.mxu0 %v528_v37 }
 0x214   : > { %v3769_v45 = vunpack.i.h.bf16 %v3767_v44  ;;  %v3768_v46 = vunpack.i.l.bf16 %v3767_v44  ;;  %v3779_v54 = vunpack.i.h.bf16 %v3777_v52  ;;  %v3778_v55 = vunpack.i.l.bf16 %v3777_v52 }
 0x216   : > { %v504_v47 = vpack.c.bf16 %v3769_v45, %v3768_v46  ;;  %v502_v57 = vpack.c.bf16 %v3779_v54, %v3778_v55  ;;  %v535_v45 = vld [vmem:[%s4470_s1 + $0x30] sm:$0xff] }
 0x218   : > { %v560_v48 = vsel %vm537_vm5, %v504_v47, 0  ;;  %v554_v58 = vsel %vm537_vm5, %v502_v57, 0 }
 0x219   : > { %566 = vmatpush.bf16.xpose.msra.mxu3 %v560_v48 }
 0x21b   : > { %v3772_v49 = vpop.permute.xlu0 %3771  ;;  %v3782_v60 = vpop.permute.xlu1 %3781 }
 0x21c   : > { %v3774_v50 = vunpack.i.h.bf16 %v3772_v49  ;;  %v3773_v51 = vunpack.i.l.bf16 %v3772_v49  ;;  %v3784_v61 = vunpack.i.h.bf16 %v3782_v60  ;;  %v3783_v62 = vunpack.i.l.bf16 %v3782_v60  ;;  %v536_v49 = vld [vmem:[%s4470_s1 + $0x38] sm:$0xff] }
 0x21e   : > { %v503_v53 = vpack.c.bf16 %v3774_v50, %v3773_v51  ;;  %v478_v63 = vpack.c.bf16 %v3784_v61, %v3783_v62 }
 0x220   : > { %v557_v56 = vsel %vm537_vm5, %v503_v53, 0 }
 0x221   : > { %567 = vmatpush.bf16.xpose.msra.mxu3 %v557_v56 }
 0x229   : > { %568 = vmatpush.bf16.xpose.msra.mxu3 %v554_v58 }
 0x231   : > { %569 = vmatpush.bf16.xpose.msra.mxu3 %v551_v59 }
 0x238   : > { %2889 = vmatmul.msk.bf16.vlgmr.msra.gmra.mxu3 %vm537_vm5, %v477_v43 }
 0x248   : > { %2890 = vmatmul.msk.bf16.gmra.mxu3 %vm537_vm5, %v478_v63 }
 0x258   : > { %2891 = vmatmul.msk.bf16.gmra.mxu3 %vm537_vm5, %v479_v9 }
 0x268   : > { %2892 = vmatmul.msk.bf16.gmra.mxu3 %vm537_vm5, %v480_v13 }
 0x2bb   : > { %v571_v16 = vpop.f32.mrf.mxu3 }
 0x2bc   : > { %v572_v17 = vadd.f32 %v571_v16, %v529_v15 }
 0x2be   : > { %v592_v18 = vsel %vm591_vm6, %v572_v17, -inf }
 0x2bf   : > { %593 = vmax.xlane.f32.xlu0 %v592_v18 }
 0x2c3   : > { %v573_v20 = vpop.f32.mrf.mxu3 }
 0x2c4   : > { %v574_v22 = vadd.f32 %v573_v20, %v530_v19 }
 0x2c6   : > { %v595_v24 = vsel %vm591_vm6, %v574_v22, -inf }
 0x2c7   : > { %596 = vmax.xlane.f32.xlu1 %v595_v24 }
 0x2cb   : > { %v576_v26 = vpop.f32.mrf.mxu3 }
 0x2cc   : > { %v577_v27 = vadd.f32 %v576_v26, %v531_v25 }
 0x2ce   : > { %v598_v28 = vsel %vm591_vm6, %v577_v27, -inf }
 0x2cf   : > { %599 = vmax.xlane.f32.xlu2 %v598_v28 }
 0x2d3   : > { %v578_v30 = vpop.f32.mrf.mxu3 }
 0x2d4   : > { %v579_v31 = vadd.f32 %v578_v30, %v532_v29 }
 0x2d6   : > { %v601_v32 = vsel %vm591_vm6, %v579_v31, -inf }
 0x2d7   : > { %602 = vmax.xlane.f32.xlu2 %v601_v32 }
 0x2db   : > { %v581_v38 = vpop.f32.mrf.mxu3 }
 0x2dc   : > { %v582_v39 = vadd.f32 %v581_v38, %v533_v36 }
 0x2de   : > { %v604_v40 = vsel %vm591_vm6, %v582_v39, -inf }
 0x2df   : > { %605 = vmax.xlane.f32.xlu0 %v604_v40 }
 0x2e3   : > { %v583_v42 = vpop.f32.mrf.mxu3 }
 0x2e4   : > { %v584_v43 = vadd.f32 %v583_v42, %v534_v41 }
 0x2e6   : > { %v607_v44 = vsel %vm591_vm6, %v584_v43, -inf }
 0x2e7   : > { %608 = vmax.xlane.f32.xlu1 %v607_v44 }
 0x2eb   : > { %v586_v46 = vpop.f32.mrf.mxu3 }
 0x2ec   : > { %v587_v47 = vadd.f32 %v586_v46, %v535_v45 }
 0x2ee   : > { %v610_v48 = vsel %vm591_vm6, %v587_v47, -inf }
 0x2ef   : > { %3806 = vrot.lane.b32.xlu2 %v3795_v8, %s3895_s25  ;;  %611 = vmax.xlane.f32.xlu0 %v610_v48 }
 0x2f3   : > { %v588_v50 = vpop.f32.mrf.mxu3 }
 0x2f4   : > { %v589_v51 = vadd.f32 %v588_v50, %v536_v49 }
 0x2f6   : > { %v613_v52 = vsel %vm591_vm6, %v589_v51, -inf }
 0x2f7   : > { %614 = vmax.xlane.f32.xlu1 %v613_v52 }
 0x303   : > { %3801 = vrot.lane.b32.xlu0 %v3795_v8, %s3897_s27 }
 0x332   : > { %v594_v53 = vpop.xlane.xlu0 %593 }
 0x333   : > { %v616_v54 = vsub.f32 %v572_v17, %v594_v53 }
 0x335   : > { %v624_v55 = vmul.f32 1.442695, %v616_v54 }
 0x337   : > { %3810 = vpow2.f32 %v624_v55 }
 0x33a   : > { %v597_v56 = vpop.xlane.xlu1 %596 }
 0x33b   : > { %v617_v57 = vsub.f32 %v574_v22, %v597_v56 }
 0x33d   : > { %v4070_v58 = vpop.eup %3810  ;;  %v626_v59 = vmul.f32 1.442695, %v617_v57 }
 0x33e   : > { %v640_v60 = vsel %vm591_vm6, %v4070_v58, 0.0 }
 0x33f   : > { %3812 = vpow2.f32 %v626_v59  ;;  %641 = vadd.xlane.f32.xlu1 %v640_v60 }
 0x342   : > { %v600_v61 = vpop.xlane.xlu2 %599 }
 0x343   : > { %v618_v62 = vsub.f32 %v577_v27, %v600_v61 }
 0x345   : > { %v3813_v63 = vpop.eup %3812  ;;  %v628_v0 = vmul.f32 1.442695, %v618_v62 }
 0x346   : > { %v643_v1 = vsel %vm591_vm6, %v3813_v63, 0.0 }
 0x347   : > { %3814 = vpow2.f32 %v628_v0  ;;  %644 = vadd.xlane.f32.xlu1 %v643_v1 }
 0x34a   : > { %v603_v3 = vpop.xlane.xlu2 %602 }
 0x34b   : > { %v619_v4 = vsub.f32 %v579_v31, %v603_v3 }
 0x34d   : > { %v4075_v6 = vpop.eup %3814  ;;  %v630_v7 = vmul.f32 1.442695, %v619_v4  ;;  %v2879_v4 = vld [vmem:[%s3952_s28 + $0x60] sm:$0xff] }
 0x34e   : > { %v646_v8 = vsel %vm591_vm6, %v4075_v6, 0.0  ;;  %775 = vmatpush.msrb.mxu2 %v2879_v4  ;;  %v3575_v4 = vld [vmem:[%s3962_s10 + $0x4] sm:$0xf] }
 0x34f   : > { %3816 = vpow2.f32 %v630_v7  ;;  %647 = vadd.xlane.f32.xlu1 %v646_v8  ;;  %v2881_v8 = vld [vmem:[%s3952_s28 + $0x70] sm:$0xff] }
 0x352   : > { %v606_v9 = vpop.xlane.xlu0 %605  ;;  %v3807_v33 = vpop.permute.xlu2 %3806 }
 0x353   : > { %v620_v10 = vsub.f32 %v582_v39, %v606_v9  ;;  %v3809_v38 = vunpack.i.h.bf16 %v3807_v33  ;;  %v3808_v39 = vunpack.i.l.bf16 %v3807_v33  ;;  %v2882_v9 = vld [vmem:[%s3952_s28 + $0x78] sm:$0xff] }
 0x354   : > { %835 = vmatpush.msra.mxu2 %v2882_v9 }
 0x355   : > { %v3817_v11 = vpop.eup %3816  ;;  %v632_v12 = vmul.f32 1.442695, %v620_v10  ;;  %v526_v41 = vpack.c.bf16 %v3809_v38, %v3808_v39 }
 0x356   : > { %v649_v13 = vsel %vm591_vm6, %v3817_v11, 0.0 }
 0x357   : > { %3818 = vpow2.f32 %v632_v12  ;;  %650 = vadd.xlane.f32.xlu0 %v649_v13 }
 0x35a   : > { %v609_v15 = vpop.xlane.xlu1 %608 }
 0x35b   : > { %v621_v16 = vsub.f32 %v584_v43, %v609_v15 }
 0x35d   : > { %v3819_v17 = vpop.eup %3818  ;;  %v634_v18 = vmul.f32 1.442695, %v621_v16 }
 0x35e   : > { %v652_v19 = vsel %vm591_vm6, %v3819_v17, 0.0 }
 0x35f   : > { %3820 = vpow2.f32 %v634_v18  ;;  %653 = vadd.xlane.f32.xlu2 %v652_v19 }
 0x362   : > { %v612_v20 = vpop.xlane.xlu0 %611 }
 0x363   : > { %v622_v22 = vsub.f32 %v587_v47, %v612_v20 }
 0x365   : > { %v3821_v24 = vpop.eup %3820  ;;  %v636_v25 = vmul.f32 1.442695, %v622_v22 }
 0x366   : > { %v655_v26 = vsel %vm591_vm6, %v3821_v24, 0.0 }
 0x367   : > { %3822 = vpow2.f32 %v636_v25  ;;  %656 = vadd.xlane.f32.xlu1 %v655_v26 }
 0x36a   : > { %v615_v27 = vpop.xlane.xlu1 %614 }
 0x36b   : > { %v623_v28 = vsub.f32 %v589_v51, %v615_v27  ;;  %v378_v27 = vld [vmem:[%s3957_s7 + $0x4] ss:$0 sm:$0xff] }
 0x36d   : > { %v3823_v29 = vpop.eup %3822  ;;  %v638_v30 = vmul.f32 1.442695, %v623_v28 }
 0x36e   : > { %v658_v31 = vsel %vm591_vm6, %v3823_v29, 0.0 }
 0x36f   : > { %3824 = vpow2.f32 %v638_v30  ;;  %659 = vadd.xlane.f32.xlu1 %v658_v31 }
 0x375   : > { %v3825_v32 = vpop.eup %3824  ;;  %v3802_v34 = vpop.permute.xlu0 %3801 }
 0x376   : > { %v3804_v35 = vunpack.i.h.bf16 %v3802_v34  ;;  %v3803_v36 = vunpack.i.l.bf16 %v3802_v34  ;;  %v661_v37 = vsel %vm591_vm6, %v3825_v32, 0.0 }
 0x377   : > { %662 = vadd.xlane.f32.xlu1 %v661_v37 }
 0x378   : > { %v527_v40 = vpack.c.bf16 %v3804_v35, %v3803_v36 }
 0x37a   : > { %701 = vmatpush.bf16.msrb.mxu0 %v527_v40 }
 0x37e   : > { %702 = vmatpush.bf16.msrb.mxu0 %v526_v41  ;;  %v3898_v41 = vmov 32.0  }
 0x382   : > { %703 = vmatpush.bf16.msrb.mxu0 %v525_v14 }
 0x3b2   : > { %v642_v42 = vpop.xlane.xlu1 %641 }
 0x3b3   : > { %3826 = vrcp.f32 %v642_v42 }
 0x3b9   : > { %v3827_v44 = vpop.eup %3826 }
 0x3ba   : > { %v645_v43 = vpop.xlane.xlu1 %644  ;;  %v672_v46 = vmul.f32 %v3827_v44, %v4070_v58 }
 0x3bb   : > { %3828 = vrcp.f32 %v645_v43 }
 0x3c1   : > { %v3829_v45 = vpop.eup %3828 }
 0x3c2   : > { %v673_v47 = vmul.f32 %v3829_v45, %v3813_v63  ;;  %v648_v49 = vpop.xlane.xlu1 %647 }
 0x3c3   : > { %3830 = vrcp.f32 %v648_v49 }
 0x3c4   : > { %v680_v48 = vpack.c.bf16 %v673_v47, %v672_v46 }
 0x3c6   : > { %2893 = vmatmul.msk.bf16.vlgmr.msrb.gmra.mxu0 %vm591_vm6, %v680_v48 }
 0x3c9   : > { %v3831_v51 = vpop.eup %3830 }
 0x3ca   : > { %v651_v50 = vpop.xlane.xlu0 %650  ;;  %v674_v2 = vmul.f32 %v3831_v51, %v4075_v6  ;;  %v2880_v6 = vld [vmem:[%s3952_s28 + $0x68] sm:$0xff] }
 0x3cb   : > { %3832 = vrcp.f32 %v651_v50  ;;  %746 = vmatpush.msrb.mxu1 %v2880_v6  ;;  %v2909_v6 = vld [vmem:[%s3962_s10 + $0x40] sm:$0xf0] }
 0x3cc   : > { %v2912_v9 = vor.u32 %v3575_v4, %v2909_v6 }
 0x3cd   : > { %804 = vmatpush.msra.mxu1 %v2881_v8 }
 0x3d1   : > { %v3833_v52 = vpop.eup %3832 }
 0x3d2   : > { %v675_v5 = vmul.f32 %v3833_v52, %v3817_v11  ;;  %v654_v53 = vpop.xlane.xlu2 %653 }
 0x3d3   : > { %3834 = vrcp.f32 %v654_v53  ;;  %v3620_v53 = vld [vmem:[%s3962_s10 + $0x9c] sm:$0xf] }
 0x3d4   : > { %v681_v14 = vpack.c.bf16 %v675_v5, %v674_v2 }
 0x3d6   : > { %2894 = vmatmul.msk.bf16.gmra.mxu0 %vm591_vm6, %v681_v14 }
 0x3d9   : > { %v3835_v55 = vpop.eup %3834 }
 0x3da   : > { %v657_v54 = vpop.xlane.xlu1 %656  ;;  %v676_v58 = vmul.f32 %v3835_v55, %v3819_v17  ;;  %v3579_v55 = vld [vmem:[%s3962_s10 + $0x84] sm:$0xf] }
 0x3db   : > { %3836 = vrcp.f32 %v657_v54  ;;  %v2970_v54 = vld [vmem:[%s3962_s10 + $0xd8] sm:$0xf0] }
 0x3e1   : > { %v3837_v56 = vpop.eup %3836 }
 0x3e2   : > { %v660_v57 = vpop.xlane.xlu1 %659  ;;  %v677_v59 = vmul.f32 %v3837_v56, %v3821_v24  ;;  %v2973_v56 = vor.u32 %v3620_v53, %v2970_v54  ;;  %v2968_v54 = vld [vmem:[%s3962_s10 + $0x98] sm:$0xf] }
 0x3e3   : > { %3838 = vrcp.f32 %v660_v57  ;;  %v2925_v57 = vld [vmem:[%s3962_s10 + $0xc0] sm:$0xf0] }
 0x3e4   : > { %v682_v60 = vpack.c.bf16 %v677_v59, %v676_v58  ;;  %v2960_v58 = vld [vmem:[%s3962_s10 + $0x90] sm:$0xf]  ;;  %1207 = vmatpush.bf16.msrb.mxu3 %v2973_v56  ;;  %v3619_v56 = vld [vmem:[%s3962_s10 + $0x94] sm:$0xf] }
 0x3e5   : > { %v3621_v59 = vld [vmem:[%s3962_s10 + $0xcc] sm:$0xf0] }
 0x3e6   : > { %2895 = vmatmul.msk.bf16.gmra.mxu0 %vm591_vm6, %v682_v60 }
 0x3e9   : > { %v3839_v62 = vpop.eup %3838 }
 0x3ea   : > { %v663_v61 = vpop.xlane.xlu1 %662  ;;  %v678_v0 = vmul.f32 %v3839_v62, %v3823_v29  ;;  %v2961_v62 = vor.u32 %v3621_v59, %v2960_v58 }
 0x3eb   : > { %3840 = vrcp.f32 %v663_v61  ;;  %v2928_v61 = vor.u32 %v3579_v55, %v2925_v57  ;;  %v3622_v55 = vld [vmem:[%s3962_s10 + $0xd4] sm:$0xf0] }
 0x3ec   : > { %3842 = vrcp.f32 %v3898_v41  ;;  %1165 = vmatpush.bf16.msra.mxu0 %v2961_v62  ;;  %v3618_v62 = vld [vmem:[%s3962_s10 + $0x54] sm:$0xf0] }
 0x3f1   : > { %v3841_v63 = vpop.eup %3840 }
 0x3f2   : > { %v679_v1 = vmul.f32 %v3841_v63, %v3825_v32  ;;  %v3843_v42 = vpop.eup %3842  ;;  %v2923_v63 = vld [vmem:[%s3962_s10 + $0x80] sm:$0xf] }
 0x3f3   : > { %v858_v43 = vmul.f32 32.0, %v3843_v42  ;;  %vm862_vm7 = vweird.f32 %v3843_v42 }
 0x3f4   : > { %v683_v3 = vpack.c.bf16 %v679_v1, %v678_v0  ;;  %v3581_v0 = vld [vmem:[%s3962_s10 + $0xbc] sm:$0xf0] }
 0x3f5   : > { %v859_v44 = vsub.f32 1.0, %v858_v43 }
 0x3f6   : > { %2896 = vmatmul.msk.bf16.gmra.mxu0 %vm591_vm6, %v683_v3  ;;  %v2924_v3 = vor.u32 %v3581_v0, %v2923_v63  ;;  %v3615_v63 = vld [vmem:[%s3962_s10 + $0x14] sm:$0xf] }
 0x3f7   : > { %v860_v45 = vmul.f32 %v3843_v42, %v859_v44  ;;  %v2946_v0 = vld [vmem:[%s3962_s10 + $0x50] sm:$0xf0] }
 0x3f8   : > { %v2949_v6 = vor.u32 %v3615_v63, %v2946_v0  ;;  %v3596_v0 = vld [vmem:[%s3967_s14 + $0x68] sm:$0xff] }
 0x443   : > { %v705_v7 = vpop.f32.mrf.mxu0 }
 0x444   : > { %2899 = vmatmul.msk.f32.vlgmr.msrb.gmra.mxu2 %vm537_vm5, %v705_v7  ;;  %v2907_v7 = vld [vmem:[%s3962_s10] sm:$0xf] }
 0x445   : > { %988 = vmatpush.bf16.msrb.mxu2 %v2928_v61  ;;  %v2952_v61 = vld [vmem:[%s3962_s10 + $0x18] sm:$0xf] }
 0x446   : > { %v2953_v4 = vor.u32 %v3618_v62, %v2952_v61 }
 0x449   : > { %989 = vmatpush.bf16.msrb.mxu2 %v2912_v9  ;;  %v3628_v9 = vld [vmem:[%s3967_s14 + $0x128] sm:$0xff] }
 0x44b   : > { %v707_v10 = vpop.f32.mrf.mxu0 }
 0x44c   : > { %2900 = vmatmul.msk.f32.gmra.mxu2 %vm537_vm5, %v707_v10  ;;  %v3577_v10 = vld [vmem:[%s3962_s10 + $0x3c] sm:$0xf0] }
 0x453   : > { %v710_v11 = vpop.f32.mrf.mxu0 }
 0x454   : > { %2897 = vmatmul.msk.f32.vlgmr.msrb.gmra.mxu1 %vm537_vm5, %v710_v11  ;;  %v2944_v11 = vld [vmem:[%s3962_s10 + $0x10] sm:$0xf] }
 0x455   : > { %974 = vmatpush.bf16.msrb.mxu1 %v2924_v3  ;;  %v3654_v3 = vld [vmem:[%s3967_s14 + $0x1f8] sm:$0xff] }
 0x45b   : > { %v712_v12 = vpop.f32.mrf.mxu0 }
 0x45c   : > { %2898 = vmatmul.msk.f32.gmra.mxu1 %vm537_vm5, %v712_v12  ;;  %v2908_v12 = vor.u32 %v3577_v10, %v2907_v7  ;;  %v3629_v7 = vld [vmem:[%s3967_s14 + $0x130] sm:$0xff]  ;;  %v3652_v10 = vld [vmem:[%s3967_s14 + $0x1e8] sm:$0xff] }
 0x45e   : > { %975 = vmatpush.bf16.msrb.mxu1 %v2908_v12  ;;  %v3651_v12 = vld [vmem:[%s3967_s14 + $0x1e0] sm:$0xff] }
 0x463   : > { %v715_v13 = vpop.f32.mrf.mxu0 }
 0x464   : > { %2901 = vmatmul.msk.f32.vlgmr.msra.gmra.mxu1 %vm537_vm5, %v715_v13  ;;  %v3617_v13 = vld [vmem:[%s3962_s10 + $0x4c] sm:$0xf0] }
 0x46b   : > { %v717_v15 = vpop.f32.mrf.mxu0 }
 0x46c   : > { %2902 = vmatmul.msk.f32.gmra.mxu1 %vm537_vm5, %v717_v15  ;;  %v3616_v15 = vld [vmem:[%s3962_s10 + $0x1c] sm:$0xf] }
 0x473   : > { %v720_v16 = vpop.f32.mrf.mxu0 }
 0x474   : > { %2903 = vmatmul.msk.f32.vlgmr.msra.gmra.mxu2 %vm537_vm5, %v720_v16  ;;  %v2954_v16 = vld [vmem:[%s3962_s10 + $0x58] sm:$0xf0] }
 0x47b   : > { %v722_v17 = vpop.f32.mrf.mxu0 }
 0x47c   : > { %2904 = vmatmul.msk.f32.gmra.mxu2 %vm537_vm5, %v722_v17  ;;  %v2945_v17 = vor.u32 %v3617_v13, %v2944_v11  ;;  %v3627_v11 = vld [vmem:[%s3967_s14 + $0x120] sm:$0xff]  ;;  %v3626_v13 = vld [vmem:[%s3967_s14 + $0x118] sm:$0xff] }
 0x47e   : > { %1166 = vmatpush.bf16.msra.mxu0 %v2945_v17  ;;  %v3649_v17 = vld [vmem:[%s3967_s14 + $0x1d0] sm:$0xff] }
 0x4c7   : > { %v777_v19 = vpop.f32.mrf.mxu2 }
 0x4cf   : > { %v780_v22 = vpop.f32.mrf.mxu2 }
 0x4d1   : > { %v748_v18 = vpop.f32.mrf.mxu1 }
 0x4d2   : > { %v778_v25 = vadd.f32 %v777_v19, %v748_v18  ;;  %v2957_v18 = vor.u32 %v3616_v15, %v2954_v16  ;;  %v3580_v19 = vld [vmem:[%s3962_s10 + $0x8c] sm:$0xf]  ;;  %v3650_v15 = vld [vmem:[%s3967_s14 + $0x1d8] sm:$0xff]  ;;  %v3625_v16 = vld [vmem:[%s3967_s14 + $0x110] sm:$0xff] }
 0x4d4   : > { %1208 = vmatpush.bf16.msrb.mxu3 %v2957_v18  ;;  %v3624_v18 = vld [vmem:[%s3967_s14 + $0x108] sm:$0xff] }
 0x4d8   : > { %1525 = vmatpush.bf16.msra.mxu3 %v3654_v3 }
 0x4d9   : > { %v751_v20 = vpop.f32.mrf.mxu1 }
 0x4da   : > { %v781_v32 = vadd.f32 %v780_v22, %v751_v20  ;;  %v2933_v20 = vld [vmem:[%s3962_s10 + $0xc8] sm:$0xf0] }
 0x4e1   : > { %v806_v24 = vpop.f32.mrf.mxu1 }
 0x4e2   : > { %v812_v26 = vadd.f32 %v806_v24, %v778_v25  ;;  %v2936_v24 = vor.u32 %v3580_v19, %v2933_v20  ;;  %v3576_v25 = vld [vmem:[%s3962_s10 + $0xc] sm:$0xf]  ;;  %v3623_v19 = vld [vmem:[%s3967_s14 + $0x100] sm:$0xff]  ;;  %v3590_v20 = vld [vmem:[%s3967_s14 + $0x38] sm:$0xff] }
 0x4e4   : > { %1016 = vmatpush.bf16.msra.mxu2 %v2936_v24  ;;  %v3638_v24 = vld [vmem:[%s3967_s14 + $0x178] sm:$0xff] }
 0x4e9   : > { %v809_v31 = vpop.f32.mrf.mxu1 }
 0x4ea   : > { %v813_v34 = vadd.f32 %v809_v31, %v781_v32  ;;  %v3578_v31 = vld [vmem:[%s3962_s10 + $0x44] sm:$0xf0] }
 0x4f7   : > { %v837_v28 = vpop.f32.mrf.mxu2 }
 0x4f8   : > { %v843_v29 = vadd.f32 %v837_v28, %v812_v26  ;;  %v2917_v26 = vld [vmem:[%s3962_s10 + $0x48] sm:$0xf0] }
 0x4f9   : > { %v2920_v32 = vor.u32 %v3576_v25, %v2917_v26  ;;  %v3589_v25 = vld [vmem:[%s3967_s14 + $0x30] sm:$0xff]  ;;  %v3647_v26 = vld [vmem:[%s3967_s14 + $0x1c0] sm:$0xff] }
 0x4fa   : > { %v845_v30 = vadd.f32 %v843_v29, %v378_v27  ;;  %v3582_v29 = vld [vmem:[%s3962_s10 + $0xc4] sm:$0xf0] }
 0x4fb   : > { %1017 = vmatpush.bf16.msra.mxu2 %v2920_v32  ;;  %v3636_v32 = vld [vmem:[%s3967_s14 + $0x168] sm:$0xff] }
 0x4fc   : > { %v847_v33 = vadd.f32 %v845_v30, %v3989_v21  ;;  %v861_v21 = vadd.f32 %v3843_v42, %v860_v45  ;;  %v2915_v30 = vld [vmem:[%s3962_s10 + $0x8] sm:$0xf] }
 0x4fe   : > { %v851_v35 = vsel %vm379_vm4, %v847_v33, 0.0  ;;  %v4110_v46 = vsel %vm862_vm7, %v3843_v42, %v861_v21 }
 0x4ff   : > { %852 = vadd.xlane.f32.xlu1 %v851_v35  ;;  %v840_v36 = vpop.f32.mrf.mxu2 }
 0x500   : > { %v844_v37 = vadd.f32 %v840_v36, %v813_v34 }
 0x502   : > { %v846_v38 = vadd.f32 %v844_v37, %v378_v27  ;;  %v2931_v27 = vld [vmem:[%s3962_s10 + $0x88] sm:$0xf]  ;;  %v2916_v37 = vor.u32 %v3578_v31, %v2915_v30  ;;  %v3646_v30 = vld [vmem:[%s3967_s14 + $0x1b8] sm:$0xff]  ;;  %v3613_v31 = vld [vmem:[%s3967_s14 + $0xf0] sm:$0xff] }
 0x504   : > { %v848_v39 = vadd.f32 %v846_v38, %v3996_v23 }
 0x506   : > { %v854_v40 = vsel %vm379_vm4, %v848_v39, 0.0 }
 0x507   : > { %855 = vadd.xlane.f32.xlu1 %v854_v40 }
 0x572   : > { %v853_v47 = vpop.xlane.xlu1 %852 }
 0x573   : > { %v864_v23 = vmul.f32 %v4110_v46, %v853_v47 }
 0x575   : > { %v4113_v48 = vsub.f32 %v847_v33, %v864_v23  ;;  %v2932_v33 = vor.u32 %v3582_v29, %v2931_v27  ;;  %v3614_v27 = vld [vmem:[%s3967_s14 + $0xf8] sm:$0xff]  ;;  %v3588_v29 = vld [vmem:[%s3967_s14 + $0x28] sm:$0xff] }
 0x577   : > { %v868_v49 = vmul.f32 %v4113_v48, %v4113_v48  ;;  %1002 = vmatpush.bf16.msra.mxu1 %v2932_v33  ;;  %v3587_v33 = vld [vmem:[%s3967_s14 + $0x20] sm:$0xff] }
 0x579   : > { %v870_v50 = vsel %vm379_vm4, %v868_v49, 0.0  ;;  %v849_v49 = vld [vmem:[%s3957_s7 + $0x5] ss:$0 sm:$0xff] }
 0x57a   : > { %871 = vadd.xlane.f32.xlu0 %v870_v50  ;;  %v856_v51 = vpop.xlane.xlu1 %855 }
 0x57b   : > { %v865_v52 = vmul.f32 %v4110_v46, %v856_v51  ;;  %1003 = vmatpush.bf16.msra.mxu1 %v2916_v37  ;;  %v3586_v37 = vld [vmem:[%s3967_s14 + $0x18] sm:$0xff] }
 0x57d   : > { %v4119_v2 = vsub.f32 %v848_v39, %v865_v52 }
 0x57f   : > { %v869_v5 = vmul.f32 %v4119_v2, %v4119_v2 }
 0x581   : > { %v873_v14 = vsel %vm379_vm4, %v869_v5, 0.0 }
 0x582   : > { %874 = vadd.xlane.f32.xlu1 %v873_v14  ;;  %v850_v14 = vld [vmem:[%s3957_s7 + $0x6] ss:$0 sm:$0xff] }
 0x5ed   : > { %v872_v60 = vpop.xlane.xlu0 %871 }
 0x5ee   : > { %v876_v1 = vmul.f32 %v872_v60, %v4110_v46  ;;  %v2969_v60 = vor.u32 %v3622_v55, %v2968_v54  ;;  %v4236_v54 = vld [vmem:[%s3957_s7 + $0x20] ss:$8 sm:$0xf] }
 0x5ef   : > { %v1111_v61 = vperm.slane %v4236_v54, 0 }
 0x5f0   : > { %v878_v8 = vadd.f32 1e-05, %v876_v1  ;;  %v3630_v1 = vld [vmem:[%s3967_s14 + $0x138] sm:$0xff] }
 0x5f1   : > { %1483 = vmatpush.bf16.msrb.mxu0 %v3630_v1 }
 0x5f2   : > { %3844 = vrsqrt.f32 %v878_v8  ;;  %vm886_vm9 = vweird.f32 %v878_v8 }
 0x5f5   : > { %v875_v22 = vpop.xlane.xlu1 %874  ;;  %1484 = vmatpush.bf16.msrb.mxu0 %v3629_v7  ;;  %v1114_v7 = vperm.slane %v4236_v54, 3 }
 0x5f6   : > { %v877_v28 = vmul.f32 %v875_v22, %v4110_v46  ;;  %v3648_v22 = vld [vmem:[%s3967_s14 + $0x1c8] sm:$0xff] }
 0x5f8   : > { %v3845_v34 = vpop.eup %3844  ;;  %v879_v35 = vadd.f32 1e-05, %v877_v28  ;;  %v3637_v28 = vld [vmem:[%s3967_s14 + $0x170] sm:$0xff] }
 0x5f9   : > { %v881_v36 = vmul.f32 %v3845_v34, %v878_v8  ;;  %vm887_vm8 = vweird.f32 %v3845_v34  ;;  %v3653_v8 = vld [vmem:[%s3967_s14 + $0x1f0] sm:$0xff]  ;;  %1485 = vmatpush.bf16.msrb.mxu0 %v3628_v9  ;;  %v3253_v9 = vld [vmem:[%s3962_s10 + $0xa0] sm:$0xf] }
 0x5fa   : > { %3846 = vrsqrt.f32 %v879_v35  ;;  %vm888_vm10 = vmor %vm886_vm9, %vm887_vm8  ;;  %vm896_vm12 = vweird.f32 %v879_v35  ;;  %1526 = vmatpush.bf16.msra.mxu3 %v3653_v8 }
 0x5fb   : > { %v882_v38 = vmul.f32 %v3845_v34, %v881_v36  ;;  %v3635_v36 = vld [vmem:[%s3967_s14 + $0x160] sm:$0xff] }
 0x5fd   : > { %v883_v39 = vmul.f32 0.5, %v882_v38  ;;  %1486 = vmatpush.bf16.msrb.mxu0 %v3627_v11  ;;  %v3644_v38 = vld [vmem:[%s3967_s14 + $0x1a8] sm:$0xff]  ;;  %v3595_v11 = vld [vmem:[%s3967_s14 + $0x60] sm:$0xff] }
 0x5fe   : > { %1527 = vmatpush.bf16.msra.mxu3 %v3652_v10  ;;  %v3661_v10 = vld [vmem:[%s3962_s10 + $0xdc] sm:$0xf0] }
 0x5ff   : > { %v884_v40 = vsub.f32 1.5, %v883_v39  ;;  %v3611_v39 = vld [vmem:[%s3967_s14 + $0xe0] sm:$0xff] }
 0x600   : > { %v3847_v41 = vpop.eup %3846 }
 0x601   : > { %v885_v42 = vmul.f32 %v3845_v34, %v884_v40  ;;  %v891_v43 = vmul.f32 %v3847_v41, %v879_v35  ;;  %vm897_vm11 = vweird.f32 %v3847_v41  ;;  %1487 = vmatpush.bf16.msrb.mxu0 %v3626_v13  ;;  %v3612_v35 = vld [vmem:[%s3967_s14 + $0xe8] sm:$0xff]  ;;  %v3634_v40 = vld [vmem:[%s3967_s14 + $0x158] sm:$0xff] }
 0x602   : > { %vm898_vm13 = vmor %vm896_vm12, %vm897_vm11  ;;  %1528 = vmatpush.bf16.msra.mxu3 %v3651_v12 }
 0x603   : > { %v892_v44 = vmul.f32 %v3847_v41, %v891_v43  ;;  %v889_v45 = vsel %vm888_vm10, %v3845_v34, %v885_v42  ;;  %v3645_v34 = vld [vmem:[%s3967_s14 + $0x1b0] sm:$0xff]  ;;  %v3643_v42 = vld [vmem:[%s3967_s14 + $0x1a0] sm:$0xff]  ;;  %v3610_v43 = vld [vmem:[%s3967_s14 + $0xd8] sm:$0xff] }
 0x604   : > { %v900_v23 = vmul.f32 %v889_v45, %v4113_v48  ;;  %v2962_v48 = vld [vmem:[%s3962_s10 + $0xd0] sm:$0xf0]  ;;  %v3584_v45 = vld [vmem:[%s3967_s14 + $0x8] sm:$0xff] }
 0x605   : > { %v893_v21 = vmul.f32 0.5, %v892_v44  ;;  %1488 = vmatpush.bf16.msrb.mxu0 %v3625_v16  ;;  %v3633_v44 = vld [vmem:[%s3967_s14 + $0x150] sm:$0xff]  ;;  %v3604_v16 = vld [vmem:[%s3967_s14 + $0xa8] sm:$0xff] }
 0x606   : > { %v902_v52 = vmul.f32 %v900_v23, %v849_v49  ;;  %1529 = vmatpush.bf16.msra.mxu3 %v3650_v15  ;;  %v3632_v23 = vld [vmem:[%s3967_s14 + $0x148] sm:$0xff]  ;;  %v3254_v15 = vor.u32 %v3661_v10, %v3253_v9  ;;  %v3255_v9 = vld [vmem:[%s3962_s10 + $0xe0] sm:$0xf0] }
 0x607   : > { %v894_v47 = vsub.f32 1.5, %v893_v21  ;;  %v3642_v21 = vld [vmem:[%s3967_s14 + $0x198] sm:$0xff] }
 0x608   : > { %v4158_v57 = vadd.f32 %v902_v52, %v850_v14  ;;  %v3631_v52 = vld [vmem:[%s3967_s14 + $0x140] sm:$0xff] }
 0x609   : > { %v895_v50 = vmul.f32 %v3847_v41, %v894_v47  ;;  %1489 = vmatpush.bf16.msrb.mxu0 %v3624_v18  ;;  %v3609_v47 = vld [vmem:[%s3967_s14 + $0xd0] sm:$0xff] }
 0x60a   : > { %1530 = vmatpush.bf16.msra.mxu3 %v3649_v17 }
 0x60b   : > { %v899_v51 = vsel %vm898_vm13, %v3847_v41, %v895_v50  ;;  %v3585_v41 = vld [vmem:[%s3967_s14 + $0x10] sm:$0xff] }
 0x60c   : > { %v901_v5 = vmul.f32 %v899_v51, %v4119_v2  ;;  %v2965_v2 = vor.u32 %v3619_v56, %v2962_v48  ;;  %v3641_v50 = vld [vmem:[%s3967_s14 + $0x190] sm:$0xff]  ;;  %v3608_v51 = vld [vmem:[%s3967_s14 + $0xc8] sm:$0xff]  ;;  %v3607_v56 = vld [vmem:[%s3967_s14 + $0xc0] sm:$0xff] }
 0x60d   : > { %1490 = vmatpush.bf16.msrb.mxu0 %v3623_v19  ;;  %v3597_v48 = vld [vmem:[%s3967_s14 + $0x70] sm:$0xff] }
 0x60e   : > { %v903_v53 = vmul.f32 %v901_v5, %v849_v49  ;;  %1531 = vmatpush.bf16.msra.mxu3 %v3648_v22  ;;  %v3583_v49 = vld [vmem:[%s3967_s14] sm:$0xff]  ;;  %v3598_v5 = vld [vmem:[%s3967_s14 + $0x78] sm:$0xff] }
 0x60f   : > { %v3657_v22 = vld [vmem:[%s3962_s10 + $0x5c] sm:$0xf0] }
 0x610   : > { %v4160_v58 = vadd.f32 %v903_v53, %v850_v14  ;;  %v3640_v53 = vld [vmem:[%s3967_s14 + $0x188] sm:$0xff] }
 0x612   : > { %v4164_v59 = vpack.c.bf16 %v4160_v58, %v4158_v57  ;;  %1532 = vmatpush.bf16.msra.mxu3 %v3647_v26 }
 0x614   : > { %2937 = vmatmul.msk.bf16.vlgmr.msrb.gmra.mxu1 %vm379_vm4, %v4164_v59  ;;  %2938 = vmatmul.msk.bf16.vlgmr.msrb.gmra.mxu2 %vm379_vm4, %v4164_v59 }
 0x615   : > { %2974 = vmatmul.msk.bf16.vlgmr.msra.gmra.mxu0 %vm379_vm4, %v4164_v59  ;;  %2977 = vmatmul.msk.bf16.vlgmr.msrb.gmra.mxu3 %vm379_vm4, %v4164_v59 }
 0x616   : > { %1193 = vmatpush.bf16.msrb.mxu2 %v2969_v60  ;;  %1179 = vmatpush.bf16.msrb.mxu1 %v2965_v2  ;;  %v3639_v60 = vld [vmem:[%s3967_s14 + $0x180] sm:$0xff]  ;;  %v3606_v2 = vld [vmem:[%s3967_s14 + $0xb8] sm:$0xff] }
 0x617   : > { %1731 = vmatpush.bf16.msra.mxu0 %v3590_v20  ;;  %1773 = vmatpush.bf16.msrb.mxu3 %v3614_v27  ;;  %v3237_v20 = vld [vmem:[%s3962_s10 + $0x20] sm:$0xf] }
 0x61a   : > { %1194 = vmatpush.bf16.msrb.mxu2 %v2953_v4  ;;  %1180 = vmatpush.bf16.msrb.mxu1 %v2949_v6  ;;  %v3605_v6 = vld [vmem:[%s3967_s14 + $0xb0] sm:$0xff] }
 0x61b   : > { %1732 = vmatpush.bf16.msra.mxu0 %v3589_v25  ;;  %1774 = vmatpush.bf16.msrb.mxu3 %v3613_v31  ;;  %v3594_v25 = vld [vmem:[%s3967_s14 + $0x58] sm:$0xff]  ;;  %v3238_v31 = vor.u32 %v3657_v22, %v3237_v20  ;;  %v3261_v22 = vld [vmem:[%s3962_s10 + $0xa8] sm:$0xf] }
 0x61f   : > { %1733 = vmatpush.bf16.msra.mxu0 %v3588_v29  ;;  %1775 = vmatpush.bf16.msrb.mxu3 %v3612_v35  ;;  %v3263_v29 = vld [vmem:[%s3962_s10 + $0xe8] sm:$0xf0] }
 0x623   : > { %1734 = vmatpush.bf16.msra.mxu0 %v3587_v33  ;;  %1776 = vmatpush.bf16.msrb.mxu3 %v3611_v39  ;;  %v3656_v39 = vld [vmem:[%s3962_s10 + $0x2c] sm:$0xf] }
 0x624   : > { %2939 = vmatmul.msk.bf16.vlgmr.msra.gmra.mxu1 %vm379_vm4, %v4164_v59  ;;  %2940 = vmatmul.msk.bf16.vlgmr.msra.gmra.mxu2 %vm379_vm4, %v4164_v59 }
 0x625   : > { %1497 = vmatpush.bf16.msra.mxu1 %v3638_v24  ;;  %1511 = vmatpush.bf16.msra.mxu2 %v3646_v30  ;;  %v4262_v30 = vld [vmem:[%s3957_s7] ss:$8 sm:$0xf] }
 0x627   : > { %1735 = vmatpush.bf16.msra.mxu0 %v3586_v37  ;;  %1777 = vmatpush.bf16.msrb.mxu3 %v3610_v43  ;;  %v917_v37 = vperm.slane %v4262_v30, 0 }
 0x629   : > { %1498 = vmatpush.bf16.msra.mxu1 %v3637_v28  ;;  %1512 = vmatpush.bf16.msra.mxu2 %v3645_v34  ;;  %v3660_v28 = vld [vmem:[%s3962_s10 + $0xac] sm:$0xf] }
 0x62a   : > { %v3266_v35 = vor.u32 %v3660_v28, %v3263_v29  ;;  %v918_v29 = vperm.slane %v4262_v30, 1 }
 0x62b   : > { %1736 = vmatpush.bf16.msra.mxu0 %v3585_v41  ;;  %1778 = vmatpush.bf16.msrb.mxu3 %v3609_v47  ;;  %v3602_v41 = vld [vmem:[%s3967_s14 + $0x98] sm:$0xff] }
 0x62d   : > { %1499 = vmatpush.bf16.msra.mxu1 %v3636_v32  ;;  %1513 = vmatpush.bf16.msra.mxu2 %v3644_v38  ;;  %v3603_v32 = vld [vmem:[%s3967_s14 + $0xa0] sm:$0xff] }
 0x62f   : > { %1737 = vmatpush.bf16.msra.mxu0 %v3584_v45  ;;  %1779 = vmatpush.bf16.msrb.mxu3 %v3608_v51 }
 0x631   : > { %1500 = vmatpush.bf16.msra.mxu1 %v3635_v36  ;;  %1514 = vmatpush.bf16.msra.mxu2 %v3643_v42  ;;  %v3593_v36 = vld [vmem:[%s3967_s14 + $0x50] sm:$0xff] }
 0x633   : > { %1738 = vmatpush.bf16.msra.mxu0 %v3583_v49  ;;  %1780 = vmatpush.bf16.msrb.mxu3 %v3607_v56  ;;  %v920_v49 = vperm.slane %v4262_v30, 3 }
 0x634   : > { %2975 = vmatmul.msk.bf16.vlgmr.msrb.gmra.mxu1 %vm379_vm4, %v4164_v59  ;;  %2976 = vmatmul.msk.bf16.vlgmr.msrb.gmra.mxu2 %vm379_vm4, %v4164_v59 }
 0x635   : > { %1501 = vmatpush.bf16.msra.mxu1 %v3634_v40  ;;  %1515 = vmatpush.bf16.msra.mxu2 %v3642_v21  ;;  %v3247_v40 = vld [vmem:[%s3962_s10 + $0x68] sm:$0xf0]  ;;  %v3601_v21 = vld [vmem:[%s3967_s14 + $0x90] sm:$0xff] }
 0x636   : > { %v3250_v45 = vor.u32 %v3656_v39, %v3247_v40 }
 0x639   : > { %1502 = vmatpush.bf16.msra.mxu1 %v3633_v44  ;;  %1516 = vmatpush.bf16.msra.mxu2 %v3641_v50  ;;  %v3592_v44 = vld [vmem:[%s3967_s14 + $0x48] sm:$0xff]  ;;  %v3591_v50 = vld [vmem:[%s3967_s14 + $0x40] sm:$0xff] }
 0x63d   : > { %1503 = vmatpush.bf16.msra.mxu1 %v3632_v23  ;;  %1517 = vmatpush.bf16.msra.mxu2 %v3640_v53 }
 0x641   : > { %1504 = vmatpush.bf16.msra.mxu1 %v3631_v52  ;;  %1518 = vmatpush.bf16.msra.mxu2 %v3639_v60  ;;  %v3600_v52 = vld [vmem:[%s3967_s14 + $0x88] sm:$0xff] }
 0x645   : > { %1745 = vmatpush.bf16.msrb.mxu1 %v3598_v5  ;;  %1759 = vmatpush.bf16.msrb.mxu2 %v3606_v2 }
 0x649   : > { %1746 = vmatpush.bf16.msrb.mxu1 %v3597_v48  ;;  %1760 = vmatpush.bf16.msrb.mxu2 %v3605_v6  ;;  %v1113_v6 = vperm.slane %v4236_v54, 2 }
 0x64d   : > { %1747 = vmatpush.bf16.msrb.mxu1 %v3596_v0  ;;  %1761 = vmatpush.bf16.msrb.mxu2 %v3604_v16  ;;  %v1112_v0 = vperm.slane %v4236_v54, 1  ;;  %v3655_v16 = vld [vmem:[%s3962_s10 + $0x24] sm:$0xf] }
 0x651   : > { %1748 = vmatpush.bf16.msrb.mxu1 %v3595_v11  ;;  %1762 = vmatpush.bf16.msrb.mxu2 %v3603_v32  ;;  %v3245_v32 = vld [vmem:[%s3962_s10 + $0x28] sm:$0xf] }
 0x655   : > { %1749 = vmatpush.bf16.msrb.mxu1 %v3594_v25  ;;  %1763 = vmatpush.bf16.msrb.mxu2 %v3602_v41 }
 0x659   : > { %1750 = vmatpush.bf16.msrb.mxu1 %v3593_v36  ;;  %1764 = vmatpush.bf16.msrb.mxu2 %v3601_v21  ;;  %v3694_v21 = vld [vmem:[%s3967_s14 + $0x2f8] sm:$0xff] }
 0x65d   : > { %1751 = vmatpush.bf16.msrb.mxu1 %v3592_v44  ;;  %1765 = vmatpush.bf16.msrb.mxu2 %v3600_v52  ;;  %v3669_v44 = vld [vmem:[%s3967_s14 + $0x230] sm:$0xff]  ;;  %v3664_v52 = vld [vmem:[%s3967_s14 + $0x208] sm:$0xff] }
 0x661   : > { %1752 = vmatpush.bf16.msrb.mxu1 %v3591_v50  ;;  %v3665_v50 = vld [vmem:[%s3967_s14 + $0x210] sm:$0xff] }
 0x691   : > { %v4232_v14 = vpop.f32.mrf.mxu1 }
 0x692   : > { %v1168_v55 = vpop.f32.mrf.mxu0  ;;  %v978_v47 = vadd.f32 %v4232_v14, %v917_v37  ;;  %v3599_v14 = vld [vmem:[%s3967_s14 + $0x80] sm:$0xff] }
 0x693   : > { %v1169_v1 = vadd.f32 %v1168_v55, %v1111_v61  ;;  %1766 = vmatpush.bf16.msrb.mxu2 %v3599_v14  ;;  %v3678_v14 = vld [vmem:[%s3967_s14 + $0x278] sm:$0xff] }
 0x694   : > { %v1024_v5 = vmax.f32 %v978_v47, 0.0  ;;  %v3666_v47 = vld [vmem:[%s3967_s14 + $0x218] sm:$0xff] }
 0x695   : > { %v1215_v12 = vmax.f32 %v1169_v1, 0.0 }
 0x697   : > { %v4243_v62 = vpop.f32.mrf.mxu2 }
 0x698   : > { %v1210_v63 = vpop.f32.mrf.mxu3  ;;  %v992_v36 = vadd.f32 %v4243_v62, %v918_v29 }
 0x699   : > { %v979_v3 = vpop.f32.mrf.mxu1  ;;  %v1211_v17 = vadd.f32 %v1210_v63, %v1114_v7 }
 0x69a   : > { %v1170_v4 = vpop.f32.mrf.mxu0  ;;  %v980_v42 = vadd.f32 %v979_v3, %v917_v37  ;;  %v1025_v39 = vmax.f32 %v992_v36, 0.0  ;;  %v3683_v36 = vld [vmem:[%s3967_s14 + $0x2a0] sm:$0xff] }
 0x69b   : > { %v1171_v8 = vadd.f32 %v1170_v4, %v1111_v61  ;;  %v1218_v33 = vmax.f32 %v1211_v17, 0.0  ;;  %v3239_v17 = vld [vmem:[%s3962_s10 + $0x60] sm:$0xf0] }
 0x69c   : > { %v1028_v51 = vmax.f32 %v980_v42, 0.0  ;;  %v3242_v54 = vor.u32 %v3655_v16, %v3239_v17  ;;  %v3674_v16 = vld [vmem:[%s3967_s14 + $0x258] sm:$0xff]  ;;  %v3685_v17 = vld [vmem:[%s3967_s14 + $0x2b0] sm:$0xff] }
 0x69d   : > { %v1219_v13 = vmax.f32 %v1171_v8, 0.0  ;;  %v3659_v8 = vld [vmem:[%s3962_s10 + $0xa4] sm:$0xf] }
 0x69e   : > { %v1032_v55 = vpack.c.bf16 %v1028_v51, %v1024_v5  ;;  %v3692_v51 = vld [vmem:[%s3967_s14 + $0x2e8] sm:$0xff]  ;;  %v3691_v5 = vld [vmem:[%s3967_s14 + $0x2e0] sm:$0xff] }
 0x69f   : > { %v1223_v18 = vpack.c.bf16 %v1219_v13, %v1215_v12  ;;  %v4252_v19 = vpop.f32.mrf.mxu2  ;;  %v3258_v12 = vor.u32 %v3659_v8, %v3255_v9  ;;  %v3402_v9 = vld [vmem:[%s3962_s10 + $0x30] sm:$0xf] }
 0x6a0   : > { %v1212_v24 = vpop.f32.mrf.mxu3 }
 0x6a1   : > { %v1213_v26 = vadd.f32 %v1212_v24, %v1114_v7  ;;  %1491 = vmatmul.bf16.vlgmr.msrb.gmra.mxu0 %v1223_v18  ;;  %v4257_v27 = vpop.f32.mrf.mxu1  ;;  %v3662_v24 = vld [vmem:[%s3962_s10 + $0xe4] sm:$0xf0] }
 0x6a2   : > { %1852 = vmatpush.bf16.msrb.mxu0 %v3254_v15  ;;  %v3262_v28 = vor.u32 %v3662_v24, %v3261_v22  ;;  %v4341_v22 = vld [vmem:[%s3957_s7 + $0x40] ss:$8 sm:$0xf] }
 0x6a3   : > { %v1222_v34 = vmax.f32 %v1213_v26, 0.0 }
 0x6a5   : > { %v1226_v38 = vpack.c.bf16 %v1222_v34, %v1218_v33  ;;  %v3658_v33 = vld [vmem:[%s3962_s10 + $0x64] sm:$0xf0]  ;;  %v994_v34 = vadd.f32 %v4252_v19, %v918_v29 }
 0x6a6   : > { %1853 = vmatpush.bf16.msrb.mxu0 %v3238_v31 }
 0x6a7   : > { %1533 = vmatmul.bf16.vlgmr.msra.gmra.mxu3 %v1226_v38  ;;  %v1019_v43 = vpop.f32.mrf.mxu2  ;;  %v1029_v37 = vmax.f32 %v994_v34, 0.0  ;;  %v919_v38 = vperm.slane %v4262_v30, 2  ;;  %v3670_v30 = vld [vmem:[%s3967_s14 + $0x238] sm:$0xff] }
 0x6a8   : > { %1894 = vmatpush.bf16.msra.mxu3 %v3266_v35  ;;  %v1020_v53 = vadd.f32 %v1019_v43, %v920_v49  ;;  %v3246_v35 = vor.u32 %v3658_v33, %v3245_v32  ;;  %v3696_v33 = vld [vmem:[%s3962_s10 + $0x3c] sm:$0xf] }
 0x6a9   : > { %v4273_v23 = vpop.f32.mrf.mxu1  ;;  %v1033_v19 = vpack.c.bf16 %v1029_v37, %v1025_v39  ;;  %v1006_v41 = vadd.f32 %v4257_v27, %v919_v38  ;;  %v3668_v27 = vld [vmem:[%s3967_s14 + $0x228] sm:$0xff]  ;;  %v3412_v34 = vld [vmem:[%s3962_s10 + $0x78] sm:$0xf0] }
 0x6aa   : > { %v1027_v61 = vmax.f32 %v1020_v53, 0.0  ;;  %v1008_v40 = vadd.f32 %v4273_v23, %v919_v38  ;;  %v3693_v23 = vld [vmem:[%s3967_s14 + $0x2f0] sm:$0xff]  ;;  %v3415_v37 = vor.u32 %v3696_v33, %v3412_v34 }
 0x6ab   : > { %v1026_v43 = vmax.f32 %v1006_v41, 0.0 }
 0x6ac   : > { %1895 = vmatpush.bf16.msra.mxu3 %v3250_v45  ;;  %v1030_v42 = vmax.f32 %v1008_v40, 0.0  ;;  %v3667_v45 = vld [vmem:[%s3967_s14 + $0x220] sm:$0xff] }
 0x6ae   : > { %v1034_v62 = vpack.c.bf16 %v1030_v42, %v1026_v43  ;;  %v3671_v42 = vld [vmem:[%s3967_s14 + $0x240] sm:$0xff]  ;;  %v3682_v43 = vld [vmem:[%s3967_s14 + $0x298] sm:$0xff] }
 0x6af   : > { %v1021_v56 = vpop.f32.mrf.mxu2 }
 0x6b0   : > { %v1022_v48 = vadd.f32 %v1021_v56, %v920_v49  ;;  %v3690_v56 = vld [vmem:[%s3967_s14 + $0x2d8] sm:$0xff] }
 0x6b1   : > { %1739 = vmatmul.bf16.vlgmr.msra.gmra.mxu0 %v1032_v55  ;;  %v1182_v60 = vpop.f32.mrf.mxu1  ;;  %v3663_v55 = vld [vmem:[%s3967_s14 + $0x200] sm:$0xff] }
 0x6b2   : > { %v1031_v2 = vmax.f32 %v1022_v48, 0.0  ;;  %v1183_v3 = vadd.f32 %v1182_v60, %v1112_v0  ;;  %2170 = vmatpush.bf16.msra.mxu0 %v3670_v30  ;;  %v3689_v60 = vld [vmem:[%s3967_s14 + $0x2d0] sm:$0xff] }
 0x6b4   : > { %v1035_v63 = vpack.c.bf16 %v1031_v2, %v1027_v61  ;;  %v1216_v10 = vmax.f32 %v1183_v3, 0.0  ;;  %v3677_v2 = vld [vmem:[%s3967_s14 + $0x270] sm:$0xff] }
 0x6b5   : > { %v3701_v3 = vld [vmem:[%s3962_s10 + $0xec] sm:$0xf0] }
 0x6b6   : > { %2171 = vmatpush.bf16.msra.mxu0 %v3669_v44 }
 0x6b7   : > { %1781 = vmatmul.bf16.vlgmr.msrb.gmra.mxu3 %v1035_v63  ;;  %v1196_v1 = vpop.f32.mrf.mxu2  ;;  %v3688_v63 = vld [vmem:[%s3967_s14 + $0x2c8] sm:$0xff] }
 0x6b8   : > { %v1197_v13 = vadd.f32 %v1196_v1, %v1113_v6  ;;  %2212 = vmatpush.bf16.msrb.mxu3 %v3694_v21  ;;  %v3418_v1 = vld [vmem:[%s3962_s10 + $0xb0] sm:$0xf] }
 0x6b9   : > { %v1184_v4 = vpop.f32.mrf.mxu1 }
 0x6ba   : > { %v1185_v7 = vadd.f32 %v1184_v4, %v1112_v0  ;;  %v1217_v25 = vmax.f32 %v1197_v13, 0.0  ;;  %2172 = vmatpush.bf16.msra.mxu0 %v3668_v27  ;;  %v3676_v4 = vld [vmem:[%s3967_s14 + $0x268] sm:$0xff] }
 0x6bc   : > { %v1220_v11 = vmax.f32 %v1185_v7, 0.0  ;;  %2213 = vmatpush.bf16.msrb.mxu3 %v3693_v23  ;;  %v3419_v7 = vor.u32 %v3701_v3, %v3418_v1  ;;  %v3681_v23 = vld [vmem:[%s3967_s14 + $0x290] sm:$0xff]  ;;  %v3679_v1 = vld [vmem:[%s3967_s14 + $0x280] sm:$0xff] }
 0x6be   : > { %v1224_v15 = vpack.c.bf16 %v1220_v11, %v1216_v10  ;;  %2173 = vmatpush.bf16.msra.mxu0 %v3667_v45  ;;  %v3697_v10 = vld [vmem:[%s3962_s10 + $0x6c] sm:$0xf0]  ;;  %v3675_v11 = vld [vmem:[%s3967_s14 + $0x260] sm:$0xff] }
 0x6bf   : > { %v1198_v18 = vpop.f32.mrf.mxu2  ;;  %v3403_v13 = vor.u32 %v3697_v10, %v3402_v9  ;;  %v3695_v10 = vld [vmem:[%s3962_s10 + $0x34] sm:$0xf] }
 0x6c0   : > { %v1199_v20 = vadd.f32 %v1198_v18, %v1113_v6  ;;  %1505 = vmatmul.bf16.vlgmr.msra.gmra.mxu1 %v1224_v15  ;;  %2214 = vmatpush.bf16.msrb.mxu3 %v3692_v51  ;;  %v3687_v6 = vld [vmem:[%s3967_s14 + $0x2c0] sm:$0xff] }
 0x6c1   : > { %3267 = vmatmul.msk.bf16.vlgmr.msrb.gmra.mxu0 %vm379_vm4, %v4164_v59  ;;  %1866 = vmatpush.bf16.msra.mxu1 %v3258_v12  ;;  %v3686_v12 = vld [vmem:[%s3967_s14 + $0x2b8] sm:$0xff] }
 0x6c2   : > { %v1221_v26 = vmax.f32 %v1199_v20, 0.0  ;;  %2174 = vmatpush.bf16.msra.mxu0 %v3666_v47 }
 0x6c4   : > { %v1225_v31 = vpack.c.bf16 %v1221_v26, %v1217_v25  ;;  %2215 = vmatpush.bf16.msrb.mxu3 %v3691_v5  ;;  %v3428_v25 = vld [vmem:[%s3962_s10 + $0xf8] sm:$0xf0]  ;;  %v3673_v26 = vld [vmem:[%s3967_s14 + $0x250] sm:$0xff]  ;;  %v3680_v5 = vld [vmem:[%s3967_s14 + $0x288] sm:$0xff] }
 0x6c5   : > { %1867 = vmatpush.bf16.msra.mxu1 %v3242_v54  ;;  %v3700_v54 = vld [vmem:[%s3962_s10 + $0xbc] sm:$0xf] }
 0x6c6   : > { %1519 = vmatmul.bf16.vlgmr.msra.gmra.mxu2 %v1225_v31  ;;  %2175 = vmatpush.bf16.msra.mxu0 %v3665_v50  ;;  %v3431_v29 = vor.u32 %v3700_v54, %v3428_v25  ;;  %v1798_v31 = vperm.slane %v4341_v22, 0  ;;  %v3698_v54 = vld [vmem:[%s3962_s10 + $0x74] sm:$0xf0] }
 0x6c7   : > { %3270 = vmatmul.msk.bf16.vlgmr.msra.gmra.mxu3 %vm379_vm4, %v4164_v59  ;;  %1880 = vmatpush.bf16.msra.mxu2 %v3262_v28  ;;  %v3684_v28 = vld [vmem:[%s3967_s14 + $0x2a8] sm:$0xff] }
 0x6c8   : > { %2216 = vmatpush.bf16.msrb.mxu3 %v3690_v56 }
 0x6ca   : > { %2176 = vmatpush.bf16.msra.mxu0 %v3664_v52 }
 0x6cb   : > { %1881 = vmatpush.bf16.msra.mxu2 %v3246_v35  ;;  %v3672_v35 = vld [vmem:[%s3967_s14 + $0x248] sm:$0xff] }
 0x6cc   : > { %2217 = vmatpush.bf16.msrb.mxu3 %v3689_v60  ;;  %v3699_v60 = vld [vmem:[%s3962_s10 + $0xb4] sm:$0xf] }
 0x6ce   : > { %2177 = vmatpush.bf16.msra.mxu0 %v3663_v55 }
 0x6d0   : > { %1753 = vmatmul.bf16.vlgmr.msrb.gmra.mxu1 %v1033_v19  ;;  %2218 = vmatpush.bf16.msrb.mxu3 %v3688_v63 }
 0x6d1   : > { %2184 = vmatpush.bf16.msrb.mxu1 %v3678_v14 }
 0x6d2   : > { %2293 = vmatpush.bf16.msrb.mxu0 %v3419_v7 }
 0x6d4   : > { %2219 = vmatpush.bf16.msrb.mxu3 %v3687_v6 }
 0x6d5   : > { %2185 = vmatpush.bf16.msrb.mxu1 %v3677_v2  ;;  %v3420_v2 = vld [vmem:[%s3962_s10 + $0xf0] sm:$0xf0] }
 0x6d6   : > { %1767 = vmatmul.bf16.vlgmr.msrb.gmra.mxu2 %v1034_v62  ;;  %2294 = vmatpush.bf16.msrb.mxu0 %v3403_v13  ;;  %v3423_v3 = vor.u32 %v3699_v60, %v3420_v2  ;;  %v3426_v13 = vld [vmem:[%s3962_s10 + $0xb8] sm:$0xf]  ;;  %v3728_v60 = vld [vmem:[%s3967_s14 + $0x3c8] sm:$0xff]  ;;  %v3715_v2 = vld [vmem:[%s3967_s14 + $0x360] sm:$0xff] }
 0x6d7   : > { %2198 = vmatpush.bf16.msrb.mxu2 %v3686_v12 }
 0x6d8   : > { %2335 = vmatpush.bf16.msra.mxu3 %v3431_v29 }
 0x6d9   : > { %2186 = vmatpush.bf16.msrb.mxu1 %v3676_v4 }
 0x6db   : > { %2199 = vmatpush.bf16.msrb.mxu2 %v3685_v17 }
 0x6dc   : > { %2336 = vmatpush.bf16.msra.mxu3 %v3415_v37 }
 0x6dd   : > { %2187 = vmatpush.bf16.msrb.mxu1 %v3675_v11  ;;  %v3404_v11 = vld [vmem:[%s3962_s10 + $0x70] sm:$0xf0] }
 0x6de   : > { %v3407_v17 = vor.u32 %v3695_v10, %v3404_v11  ;;  %v3725_v10 = vld [vmem:[%s3967_s14 + $0x3b0] sm:$0xff]  ;;  %v3712_v11 = vld [vmem:[%s3967_s14 + $0x348] sm:$0xff] }
 0x6df   : > { %2200 = vmatpush.bf16.msrb.mxu2 %v3684_v28  ;;  %v1799_v28 = vperm.slane %v4341_v22, 1 }
 0x6e0   : > { %3268 = vmatmul.msk.bf16.vlgmr.msra.gmra.mxu1 %vm379_vm4, %v4164_v59 }
 0x6e1   : > { %2188 = vmatpush.bf16.msrb.mxu1 %v3674_v16  ;;  %v3702_v16 = vld [vmem:[%s3962_s10 + $0xf4] sm:$0xf0] }
 0x6e3   : > { %2201 = vmatpush.bf16.msrb.mxu2 %v3683_v36 }
 0x6e5   : > { %2189 = vmatpush.bf16.msrb.mxu1 %v3673_v26 }
 0x6e6   : > { %3269 = vmatmul.msk.bf16.vlgmr.msra.gmra.mxu2 %vm379_vm4, %v4164_v59 }
 0x6e7   : > { %2202 = vmatpush.bf16.msrb.mxu2 %v3682_v43 }
 0x6e9   : > { %2190 = vmatpush.bf16.msrb.mxu1 %v3672_v35 }
 0x6eb   : > { %2203 = vmatpush.bf16.msrb.mxu2 %v3681_v23  ;;  %v3704_v23 = vld [vmem:[%s3967_s14 + $0x308] sm:$0xff] }
 0x6ed   : > { %2191 = vmatpush.bf16.msrb.mxu1 %v3671_v42 }
 0x6ef   : > { %2204 = vmatpush.bf16.msrb.mxu2 %v3680_v5 }
 0x6f1   : > { %2307 = vmatpush.bf16.msra.mxu1 %v3423_v3  ;;  %v4410_v3 = vld [vmem:[%s3957_s7 + $0x60] ss:$8 sm:$0xf] }
 0x6f3   : > { %2205 = vmatpush.bf16.msrb.mxu2 %v3679_v1  ;;  %v3714_v1 = vld [vmem:[%s3967_s14 + $0x358] sm:$0xff] }
 0x6f5   : > { %2308 = vmatpush.bf16.msra.mxu1 %v3407_v17 }
 0x71e   : > { %v1492_v49 = vpop.f32.mrf.mxu0 }
 0x726   : > { %v1494_v53 = vpop.f32.mrf.mxu0 }
 0x72a   : > { %v4316_v48 = vpop.f32.mrf.mxu3 }
 0x72e   : > { %v4320_v61 = vpop.f32.mrf.mxu0 }
 0x732   : > { %v4324_v0 = vpop.f32.mrf.mxu3 }
 0x736   : > { %v4330_v8 = vpop.f32.mrf.mxu0 }
 0x73a   : > { %v4336_v15 = vpop.f32.mrf.mxu3 }
 0x73d   : > { %v1506_v18 = vpop.f32.mrf.mxu1 }
 0x73e   : > { %v1507_v20 = vadd.f32 %v1506_v18, %v1492_v49  ;;  %v1855_v24 = vpop.f32.mrf.mxu0  ;;  %v1801_v49 = vperm.slane %v4341_v22, 3  ;;  %v3427_v18 = vor.u32 %v3702_v16, %v3426_v13  ;;  %v3724_v16 = vld [vmem:[%s3967_s14 + $0x3a8] sm:$0xff] }
 0x73f   : > { %v1856_v38 = vadd.f32 %v1855_v24, %v1798_v31 }
 0x740   : > { %2321 = vmatpush.bf16.msra.mxu2 %v3427_v18  ;;  %v3711_v18 = vld [vmem:[%s3967_s14 + $0x340] sm:$0xff] }
 0x741   : > { %v1902_v62 = vmax.f32 %v1856_v38, 0.0 }
 0x742   : > { %v4348_v32 = vpop.f32.mrf.mxu3 }
 0x745   : > { %v1508_v39 = vpop.f32.mrf.mxu1 }
 0x746   : > { %v1509_v40 = vadd.f32 %v1508_v39, %v1494_v53  ;;  %v1857_v19 = vpop.f32.mrf.mxu0 }
 0x747   : > { %v1858_v41 = vadd.f32 %v1857_v19, %v1798_v31 }
 0x749   : > { %v1906_v30 = vmax.f32 %v1858_v41, 0.0  ;;  %v1520_v44 = vpop.f32.mrf.mxu2 }
 0x74a   : > { %v1521_v27 = vadd.f32 %v1520_v44, %v1507_v20  ;;  %v1897_v45 = vpop.f32.mrf.mxu3  ;;  %v3708_v44 = vld [vmem:[%s3967_s14 + $0x328] sm:$0xff] }
 0x74b   : > { %v1910_v21 = vpack.c.bf16 %v1906_v30, %v1902_v62  ;;  %v1898_v53 = vadd.f32 %v1897_v45, %v1801_v49  ;;  %v3709_v30 = vld [vmem:[%s3967_s14 + $0x330] sm:$0xff]  ;;  %v3706_v45 = vld [vmem:[%s3967_s14 + $0x318] sm:$0xff] }
 0x74c   : > { %v1535_v47 = vadd.f32 %v4316_v48, %v1521_v27  ;;  %v3707_v27 = vld [vmem:[%s3967_s14 + $0x320] sm:$0xff] }
 0x74d   : > { %2178 = vmatmul.bf16.vlgmr.msra.gmra.mxu0 %v1910_v21  ;;  %v1754_v50 = vpop.f32.mrf.mxu1  ;;  %v3734_v21 = vld [vmem:[%s3967_s14 + $0x3f8] sm:$0xff] }
 0x74e   : > { %v1741_v51 = vadd.f32 %v4320_v61, %v1535_v47  ;;  %v1905_v61 = vmax.f32 %v1898_v53, 0.0  ;;  %v3705_v47 = vld [vmem:[%s3967_s14 + $0x310] sm:$0xff]  ;;  %v3730_v53 = vld [vmem:[%s3967_s14 + $0x3d8] sm:$0xff] }
 0x750   : > { %v1755_v52 = vadd.f32 %v1754_v50, %v1741_v51  ;;  %v3703_v50 = vld [vmem:[%s3967_s14 + $0x300] sm:$0xff] }
 0x751   : > { %v1522_v55 = vpop.f32.mrf.mxu2  ;;  %v3731_v51 = vld [vmem:[%s3967_s14 + $0x3e0] sm:$0xff] }
 0x752   : > { %v1523_v56 = vadd.f32 %v1522_v55, %v1509_v40  ;;  %v1899_v14 = vpop.f32.mrf.mxu3  ;;  %v1800_v40 = vperm.slane %v4341_v22, 2  ;;  %v3710_v22 = vld [vmem:[%s3967_s14 + $0x338] sm:$0xff]  ;;  %v3717_v55 = vld [vmem:[%s3967_s14 + $0x370] sm:$0xff] }
 0x753   : > { %v1900_v48 = vadd.f32 %v1899_v14, %v1801_v49  ;;  %2611 = vmatpush.bf16.msra.mxu0 %v3710_v22  ;;  %v3732_v49 = vld [vmem:[%s3967_s14 + $0x3e8] sm:$0xff]  ;;  %v2240_v22 = vperm.slane %v4410_v3, 1 }
 0x754   : > { %v1537_v63 = vadd.f32 %v4324_v0, %v1523_v56  ;;  %v3729_v56 = vld [vmem:[%s3967_s14 + $0x3d0] sm:$0xff]  ;;  %v3716_v14 = vld [vmem:[%s3967_s14 + $0x368] sm:$0xff] }
 0x755   : > { %v1909_v4 = vmax.f32 %v1900_v48, 0.0  ;;  %v1756_v6 = vpop.f32.mrf.mxu1 }
 0x756   : > { %v1743_v7 = vadd.f32 %v4330_v8, %v1537_v63  ;;  %v3410_v8 = vld [vmem:[%s3962_s10 + $0x38] sm:$0xf]  ;;  %v3727_v63 = vld [vmem:[%s3967_s14 + $0x3c0] sm:$0xff] }
 0x757   : > { %v1913_v9 = vpack.c.bf16 %v1909_v4, %v1905_v61  ;;  %v3411_v26 = vor.u32 %v3698_v54, %v3410_v8  ;;  %2612 = vmatpush.bf16.msra.mxu0 %v3709_v30  ;;  %v3726_v4 = vld [vmem:[%s3967_s14 + $0x3b8] sm:$0xff]  ;;  %v3723_v54 = vld [vmem:[%s3967_s14 + $0x3a0] sm:$0xff] }
 0x758   : > { %v1757_v12 = vadd.f32 %v1756_v6, %v1743_v7  ;;  %v3713_v7 = vld [vmem:[%s3967_s14 + $0x350] sm:$0xff] }
 0x759   : > { %2220 = vmatmul.bf16.vlgmr.msrb.gmra.mxu3 %v1913_v9  ;;  %v1768_v0 = vpop.f32.mrf.mxu2  ;;  %2322 = vmatpush.bf16.msra.mxu2 %v3411_v26  ;;  %v2239_v9 = vperm.slane %v4410_v3, 0 }
 0x75a   : > { %v1769_v20 = vadd.f32 %v1768_v0, %v1755_v52  ;;  %2653 = vmatpush.bf16.msrb.mxu3 %v3734_v21  ;;  %v3718_v52 = vld [vmem:[%s3967_s14 + $0x378] sm:$0xff] }
 0x75b   : > { %2613 = vmatpush.bf16.msra.mxu0 %v3708_v44 }
 0x75c   : > { %v4371_v24 = vadd.f32 %v4336_v15, %v1769_v20 }
 0x75d   : > { %3432 = vmatmul.msk.bf16.vlgmr.msrb.gmra.mxu0 %vm379_vm4, %v4164_v59  ;;  %v1869_v25 = vpop.f32.mrf.mxu1 }
 0x75e   : > { %v1870_v33 = vadd.f32 %v1869_v25, %v1799_v28 }
 0x75f   : > { %2614 = vmatpush.bf16.msra.mxu0 %v3707_v27 }
 0x760   : > { %v1903_v15 = vmax.f32 %v1870_v33, 0.0  ;;  %v3721_v33 = vld [vmem:[%s3967_s14 + $0x390] sm:$0xff] }
 0x761   : > { %v1770_v29 = vpop.f32.mrf.mxu2 }
 0x762   : > { %v1771_v31 = vadd.f32 %v1770_v29, %v1757_v12  ;;  %v3722_v29 = vld [vmem:[%s3967_s14 + $0x398] sm:$0xff] }
 0x763   : > { %2615 = vmatpush.bf16.msra.mxu0 %v3706_v45 }
 0x764   : > { %v4379_v34 = vadd.f32 %v4348_v32, %v1771_v31 }
 0x765   : > { %v1871_v35 = vpop.f32.mrf.mxu1 }
 0x766   : > { %v1872_v36 = vadd.f32 %v1871_v35, %v1799_v28  ;;  %v2242_v35 = vperm.slane %v4410_v3, 3 }
 0x767   : > { %2616 = vmatpush.bf16.msra.mxu0 %v3705_v47 }
 0x768   : > { %v1907_v37 = vmax.f32 %v1872_v36, 0.0 }
 0x769   : > { %3435 = vmatmul.msk.bf16.vlgmr.msra.gmra.mxu3 %vm379_vm4, %v4164_v59  ;;  %v1883_v38 = vpop.f32.mrf.mxu2 }
 0x76a   : > { %v1911_v39 = vpack.c.bf16 %v1907_v37, %v1903_v15  ;;  %v1884_v19 = vadd.f32 %v1883_v38, %v1800_v40  ;;  %v3720_v37 = vld [vmem:[%s3967_s14 + $0x388] sm:$0xff] }
 0x76b   : > { %2617 = vmatpush.bf16.msra.mxu0 %v3704_v23 }
 0x76c   : > { %2192 = vmatmul.bf16.vlgmr.msrb.gmra.mxu1 %v1911_v39  ;;  %v1904_v42 = vmax.f32 %v1884_v19, 0.0  ;;  %v3719_v19 = vld [vmem:[%s3967_s14 + $0x380] sm:$0xff] }
 0x76d   : > { %2625 = vmatpush.bf16.msrb.mxu1 %v3718_v52 }
 0x76f   : > { %2618 = vmatpush.bf16.msra.mxu0 %v3703_v50 }
 0x771   : > { %v1885_v41 = vpop.f32.mrf.mxu2  ;;  %2626 = vmatpush.bf16.msrb.mxu1 %v3717_v55  ;;  %v2241_v55 = vperm.slane %v4410_v3, 2 }
 0x772   : > { %v1886_v32 = vadd.f32 %v1885_v41, %v1800_v40 }
 0x774   : > { %v1908_v43 = vmax.f32 %v1886_v32, 0.0 }
 0x775   : > { %2627 = vmatpush.bf16.msrb.mxu1 %v3716_v14 }
 0x776   : > { %v1912_v62 = vpack.c.bf16 %v1908_v43, %v1904_v42 }
 0x778   : > { %2206 = vmatmul.bf16.vlgmr.msrb.gmra.mxu2 %v1912_v62 }
 0x779   : > { %2628 = vmatpush.bf16.msrb.mxu1 %v3715_v2  ;;  %2639 = vmatpush.bf16.msrb.mxu2 %v3726_v4 }
 0x77c   : > { %3433 = vmatmul.msk.bf16.vlgmr.msra.gmra.mxu1 %vm379_vm4, %v4164_v59 }
 0x77d   : > { %2629 = vmatpush.bf16.msrb.mxu1 %v3714_v1  ;;  %2640 = vmatpush.bf16.msrb.mxu2 %v3725_v10  ;;  %v2669_v10 = vld [vmem:[%s3957_s7 + $0x7] ss:$0 sm:$0xff] }
 0x781   : > { %2630 = vmatpush.bf16.msrb.mxu1 %v3713_v7  ;;  %2641 = vmatpush.bf16.msrb.mxu2 %v3724_v16 }
 0x785   : > { %2631 = vmatpush.bf16.msrb.mxu1 %v3712_v11  ;;  %2642 = vmatpush.bf16.msrb.mxu2 %v3723_v54 }
 0x788   : > { %3434 = vmatmul.msk.bf16.vlgmr.msra.gmra.mxu2 %vm379_vm4, %v4164_v59  ;;  %v3733_v59 = vld [vmem:[%s3967_s14 + $0x3f0] sm:$0xff] }
 0x789   : > { %2654 = vmatpush.bf16.msrb.mxu3 %v3733_v59  ;;  %2632 = vmatpush.bf16.msrb.mxu1 %v3711_v18 }
 0x78a   : > { %2643 = vmatpush.bf16.msrb.mxu2 %v3722_v29 }
 0x78d   : > { %2655 = vmatpush.bf16.msrb.mxu3 %v3732_v49 }
 0x78e   : > { %2644 = vmatpush.bf16.msrb.mxu2 %v3721_v33 }
 0x791   : > { %2656 = vmatpush.bf16.msrb.mxu3 %v3731_v51 }
 0x792   : > { %2645 = vmatpush.bf16.msrb.mxu2 %v3720_v37 }
 0x795   : > { %2657 = vmatpush.bf16.msrb.mxu3 %v3730_v53 }
 0x796   : > { %2646 = vmatpush.bf16.msrb.mxu2 %v3719_v19 }
 0x799   : > { %2658 = vmatpush.bf16.msrb.mxu3 %v3729_v56 }
 0x79d   : > { %2659 = vmatpush.bf16.msrb.mxu3 %v3728_v60 }
 0x7a1   : > { %2660 = vmatpush.bf16.msrb.mxu3 %v3727_v63 }
 0x7ca   : > { %v2179_v5 = vpop.f32.mrf.mxu0 }
 0x7d2   : > { %v2181_v48 = vpop.f32.mrf.mxu0 }
 0x7da   : > { %v2296_v61 = vpop.f32.mrf.mxu0 }
 0x7db   : > { %v2297_v12 = vadd.f32 %v2296_v61, %v2239_v9 }
 0x7dc   : > { %v2221_v6 = vpop.f32.mrf.mxu3 }
 0x7dd   : > { %v2343_v20 = vmax.f32 %v2297_v12, 0.0 }
 0x7e2   : > { %v2298_v13 = vpop.f32.mrf.mxu0 }
 0x7e3   : > { %v2299_v17 = vadd.f32 %v2298_v13, %v2239_v9 }
 0x7e4   : > { %v2223_v0 = vpop.f32.mrf.mxu3 }
 0x7e5   : > { %v2347_v8 = vmax.f32 %v2299_v17, 0.0 }
 0x7e7   : > { %v2351_v25 = vpack.c.bf16 %v2347_v8, %v2343_v20 }
 0x7e9   : > { %2619 = vmatmul.bf16.vlgmr.msra.gmra.mxu0 %v2351_v25  ;;  %v2193_v26 = vpop.f32.mrf.mxu1 }
 0x7ea   : > { %v2194_v28 = vadd.f32 %v2193_v26, %v2179_v5 }
 0x7ec   : > { %v2338_v31 = vpop.f32.mrf.mxu3 }
 0x7ed   : > { %v2339_v38 = vadd.f32 %v2338_v31, %v2242_v35 }
 0x7ef   : > { %v2346_v41 = vmax.f32 %v2339_v38, 0.0 }
 0x7f1   : > { %v2195_v36 = vpop.f32.mrf.mxu1 }
 0x7f2   : > { %v2196_v15 = vadd.f32 %v2195_v36, %v2181_v48 }
 0x7f4   : > { %v2340_v39 = vpop.f32.mrf.mxu3 }
 0x7f5   : > { %v2341_v40 = vadd.f32 %v2340_v39, %v2242_v35 }
 0x7f7   : > { %v2350_v32 = vmax.f32 %v2341_v40, 0.0 }
 0x7f9   : > { %v2354_v42 = vpack.c.bf16 %v2350_v32, %v2346_v41  ;;  %v2310_v43 = vpop.f32.mrf.mxu1 }
 0x7fa   : > { %v2311_v27 = vadd.f32 %v2310_v43, %v2240_v22 }
 0x7fb   : > { %2661 = vmatmul.bf16.vlgmr.msrb.gmra.mxu3 %v2354_v42  ;;  %v2207_v62 = vpop.f32.mrf.mxu2 }
 0x7fc   : > { %v2208_v30 = vadd.f32 %v2207_v62, %v2194_v28  ;;  %v2344_v23 = vmax.f32 %v2311_v27, 0.0 }
 0x7fe   : > { %v2222_v44 = vadd.f32 %v2221_v6, %v2208_v30 }
 0x800   : > { %v2226_v45 = vadd.f32 %v2222_v44, %v4371_v24 }
 0x801   : > { %v2312_v21 = vpop.f32.mrf.mxu1 }
 0x802   : > { %v2313_v47 = vadd.f32 %v2312_v21, %v2240_v22 }
 0x803   : > { %v2209_v59 = vpop.f32.mrf.mxu2 }
 0x804   : > { %v2348_v49 = vmax.f32 %v2313_v47, 0.0  ;;  %v2210_v50 = vadd.f32 %v2209_v59, %v2196_v15  ;;  %v2674_v47 = vld [vmem:[%s3957_s7 + $0x80] ss:$0 sm:$0xff] }
 0x806   : > { %v2352_v51 = vpack.c.bf16 %v2348_v49, %v2344_v23  ;;  %v2224_v52 = vadd.f32 %v2223_v0, %v2210_v50  ;;  %v2675_v50 = vld [vmem:[%s3957_s7 + $0x81] ss:$0 sm:$0xff] }
 0x808   : > { %v2227_v5 = vadd.f32 %v2224_v52, %v4379_v34  ;;  %2633 = vmatmul.bf16.vlgmr.msrb.gmra.mxu1 %v2352_v51 }
 0x80b   : > { %v2324_v53 = vpop.f32.mrf.mxu2 }
 0x80c   : > { %v2325_v56 = vadd.f32 %v2324_v53, %v2241_v55 }
 0x80e   : > { %v2345_v60 = vmax.f32 %v2325_v56, 0.0 }
 0x813   : > { %v2326_v14 = vpop.f32.mrf.mxu2 }
 0x814   : > { %v2327_v48 = vadd.f32 %v2326_v14, %v2241_v55 }
 0x816   : > { %v2349_v24 = vmax.f32 %v2327_v48, 0.0 }
 0x818   : > { %v2353_v2 = vpack.c.bf16 %v2349_v24, %v2345_v60 }
 0x81a   : > { %2647 = vmatmul.bf16.vlgmr.msrb.gmra.mxu2 %v2353_v2 }
 0x866   : > { %v2620_v1 = vpop.f32.mrf.mxu0 }
 0x86e   : > { %v2622_v12 = vpop.f32.mrf.mxu0 }
 0x87e   : > { %v2662_v4 = vpop.f32.mrf.mxu3 }
 0x885   : > { %v2634_v63 = vpop.f32.mrf.mxu1 }
 0x886   : > { %v2635_v61 = vadd.f32 %v2634_v63, %v2620_v1  ;;  %v2664_v18 = vpop.f32.mrf.mxu3 }
 0x88d   : > { %v2636_v34 = vpop.f32.mrf.mxu1 }
 0x88e   : > { %v2637_v3 = vadd.f32 %v2636_v34, %v2622_v12 }
 0x89d   : > { %v2648_v6 = vpop.f32.mrf.mxu2 }
 0x89e   : > { %v2649_v7 = vadd.f32 %v2648_v6, %v2635_v61 }
 0x8a0   : > { %v2663_v9 = vadd.f32 %v2662_v4, %v2649_v7 }
 0x8a2   : > { %v2667_v11 = vadd.f32 %v2663_v9, %v2226_v45 }
 0x8a4   : > { %v2670_v13 = vadd.f32 %v2669_v10, %v2667_v11 }
 0x8a5   : > { %v2650_v16 = vpop.f32.mrf.mxu2 }
 0x8a6   : > { %v2651_v17 = vadd.f32 %v2650_v16, %v2637_v3  ;;  %v2672_v0 = vadd.f32 %v2670_v13, %v4158_v57 }
 0x8a8   : > { %v2665_v20 = vadd.f32 %v2664_v18, %v2651_v17  ;;  %v2676_v8 = vsel %vm379_vm4, %v2672_v0, 0.0 }
 0x8a9   : > { %2677 = vadd.xlane.f32.xlu2 %v2676_v8 }
 0x8aa   : > { %v2668_v54 = vadd.f32 %v2665_v20, %v2227_v5 }
 0x8ac   : > { %v2671_v25 = vadd.f32 %v2669_v10, %v2668_v54 }
 0x8ae   : > { %v2673_v26 = vadd.f32 %v2671_v25, %v4160_v58 }
 0x8b0   : > { %v2679_v28 = vsel %vm379_vm4, %v2673_v26, 0.0 }
 0x8b1   : > { %2680 = vadd.xlane.f32.xlu0 %v2679_v28 }
 0x91c   : > { %v2678_v29 = vpop.xlane.xlu2 %2677 }
 0x91d   : > { %v2682_v31 = vmul.f32 %v2678_v29, %v4110_v46 }
 0x91f   : > { %v2684_v33 = vsub.f32 %v2672_v0, %v2682_v31 }
 0x921   : > { %v2686_v35 = vmul.f32 %v2684_v33, %v2684_v33 }
 0x923   : > { %v2688_v36 = vsel %vm379_vm4, %v2686_v35, 0.0 }
 0x924   : > { %v2681_v57 = vpop.xlane.xlu0 %2680  ;;  %2689 = vadd.xlane.f32.xlu1 %v2688_v36 }
 0x925   : > { %v2683_v15 = vmul.f32 %v2681_v57, %v4110_v46 }
 0x927   : > { %v2685_v37 = vsub.f32 %v2673_v26, %v2683_v15 }
 0x929   : > { %v2687_v38 = vmul.f32 %v2685_v37, %v2685_v37 }
 0x92b   : > { %v2691_v39 = vsel %vm379_vm4, %v2687_v38, 0.0 }
 0x92c   : > { %2692 = vadd.xlane.f32.xlu2 %v2691_v39 }
 0x997   : > { %v2690_v58 = vpop.xlane.xlu1 %2689 }
 0x998   : > { %v2694_v40 = vmul.f32 %v2690_v58, %v4110_v46 }
 0x99a   : > { %v2696_v19 = vadd.f32 1e-05, %v2694_v40 }
 0x99c   : > { %3848 = vrsqrt.f32 %v2696_v19  ;;  %vm2704_vm15 = vweird.f32 %v2696_v19 }
 0x99f   : > { %v2693_v41 = vpop.xlane.xlu2 %2692 }
 0x9a0   : > { %v2695_v32 = vmul.f32 %v2693_v41, %v4110_v46 }
 0x9a2   : > { %v3849_v42 = vpop.eup %3848  ;;  %v2697_v43 = vadd.f32 1e-05, %v2695_v32 }
 0x9a3   : > { %v2699_v62 = vmul.f32 %v3849_v42, %v2696_v19  ;;  %vm2705_vm14 = vweird.f32 %v3849_v42 }
 0x9a4   : > { %3850 = vrsqrt.f32 %v2697_v43  ;;  %vm2706_vm0 = vmor %vm2704_vm15, %vm2705_vm14  ;;  %vm2714_vm2 = vweird.f32 %v2697_v43 }
 0x9a5   : > { %v2700_v22 = vmul.f32 %v3849_v42, %v2699_v62 }
 0x9a7   : > { %v2701_v30 = vmul.f32 0.5, %v2700_v22 }
 0x9a9   : > { %v2702_v44 = vsub.f32 1.5, %v2701_v30 }
 0x9aa   : > { %v3851_v27 = vpop.eup %3850 }
 0x9ab   : > { %v2703_v45 = vmul.f32 %v3849_v42, %v2702_v44  ;;  %v2709_v21 = vmul.f32 %v3851_v27, %v2697_v43  ;;  %vm2715_vm1 = vweird.f32 %v3851_v27 }
 0x9ac   : > { %vm2716_vm3 = vmor %vm2714_vm2, %vm2715_vm1 }
 0x9ad   : > { %v2707_v59 = vsel %vm2706_vm0, %v3849_v42, %v2703_v45  ;;  %v2710_v23 = vmul.f32 %v3851_v27, %v2709_v21 }
 0x9ae   : > { %v2718_v49 = vmul.f32 %v2707_v59, %v2684_v33 }
 0x9af   : > { %v2711_v46 = vmul.f32 0.5, %v2710_v23 }
 0x9b0   : > { %v2720_v51 = vmul.f32 %v2718_v49, %v2674_v47 }
 0x9b1   : > { %v2712_v52 = vsub.f32 1.5, %v2711_v46 }
 0x9b2   : > { %v2722_v5 = vadd.f32 %v2720_v51, %v2675_v50 }
 0x9b3   : > { %v2713_v53 = vmul.f32 %v3851_v27, %v2712_v52 }
 0x9b4   : > { %2724 = vst.msk [vmem:[#allocation2] sm:$0xff] %vm379_vm4, %v2722_v5 }
 0x9b5   : > { %v2717_v55 = vsel %vm2716_vm3, %v3851_v27, %v2713_v53 }
 0x9b6   : > { %v2719_v56 = vmul.f32 %v2717_v55, %v2685_v37 }
 0x9b8   : > { %v2721_v14 = vmul.f32 %v2719_v56, %v2674_v47  ;;  %2729 = sbr.rel (%p3564_p5) target bundleno = 2631 (0xa47), region = 52 }
 0x9ba   : > { %v2723_v48 = vadd.f32 %v2721_v14, %v2675_v50 }
 0x9bc   : > { %2725 = vst.msk [vmem:[#allocation2 + $0x8] sm:$0xff] %vm379_vm4, %v2723_v48 }
 0x9bd   : > { %v2733_v60 = vld [vmem:[%s4470_s1 + $0x68] sm:$0xff]  ;;  %v2732_v24 = vld [vmem:[%s4470_s1 + $0x60] sm:$0xff]  ;;  %v2731_v2 = vld [vmem:[%s4470_s1 + $0x58] sm:$0xff]  ;;  %vm2765_vm5 = vcmask 130048  }
 0x9be   : > { %2754 = vmatpush.msra.mxu0 %v2733_v60  ;;  %3737 = vmatpush.msra.mxu1 %v2733_v60  ;;  %v2730_v63 = vld [vmem:[%s4470_s1 + $0x50] sm:$0xff] }
 0x9bf   : > { %v3852_v1 = vld [vmem:[%s4470_s1 + $0x70] ss:$0 sm:$0xff] }
 0x9c0   : > { %2755 = vmatpush.msra.mxu0 %v2732_v24  ;;  %3738 = vmatpush.msra.mxu1 %v2732_v24 }
 0x9c2   : > { %2756 = vmatpush.msra.mxu0 %v2731_v2  ;;  %3739 = vmatpush.msra.mxu1 %v2731_v2 }
 0x9c4   : > { %2757 = vmatpush.msra.mxu0 %v2730_v63  ;;  %3740 = vmatpush.msra.mxu1 %v2730_v63 }
 0x9c5   : > { %3565 = vmatmul.msk.f32.vlgmr.msra.gmra.mxu0 %vm379_vm4, %v2722_v5  ;;  %3566 = vmatmul.msk.f32.vlgmr.msra.gmra.mxu1 %vm379_vm4, %v2723_v48 }
 0xa42   : > { %v2759_v61 = vpop.f32.mrf.mxu0  ;;  %v2762_v4 = vpop.f32.mrf.mxu1 }
 0xa43   : > { %v2760_v6 = vadd.f32 %v3852_v1, %v2759_v61  ;;  %v2763_v7 = vadd.f32 %v3852_v1, %v2762_v4 }
 0xa45   : > { %2766 = vst.msk [vmem:[#allocation3] sm:$0xff] %vm2765_vm5, %v2760_v6 }
 0xa46   : > { %2767 = vst.msk [vmem:[#allocation3 + $0x8] sm:$0xff] %vm2765_vm5, %v2763_v7 }
 0xa47 PF: > { %p3745_p6 = scmp.eq.s32.totalorder %s3943_s22, 1  ;;  %s3899_s11 = smov [#allocation3]  }
 0xa48   : > { %s2773_s12 = sshll.u32 %s3899_s11, 4  ;;  %s2775_s16 = sshll.u32 %s4475_s6, 4  ;;  %s2774_s12 = int_to_ptr.vmem [resolvable:$true] %s2773_s12  ;;  %s2776_s16 = int_to_ptr.hbm [resolvable:$true] %s2775_s16 }
 0xa49   : > { %s3900_s17 = smov 128   ;;  %s3901_s18 = smov 8  }
 0xa4a   : > { %3742 = dma.vmem_to_hbm [thread:$0]  (%p3745_p6), %s2774_s12, 256, %s2776_s16, [#allocation4], %s3900_s17, %s3900_s17, %s3901_s18  }
 0xa4b   : > { %3886 = dma.done.wait (%p3745_p6), [#allocation4], 256  }
 0xa4c   : > { %3888 = vsyncadd (%p3745_p6), [#allocation4], 4294967040 }
 0xa4d PF: > { %s17_s21 = sadd.s32 1, %s3891_s21  }
 0xa4e   : > { %p14_p7 = scmp.ge.s32.totalorder %s17_s21, 4  }
 0xa50   :  { %16 = sbr.rel (!%p14_p7) target bundleno = 1 (0x1), region = 94 }
 0xa55   :  { %2792 = vsyncpa [#allocation4], 1 }
 0xa56   :  { %2794 = vsyncpa [#allocation4 + $0x1], 1 }

</bundles_post_ra>
